<compile_context>
chip_gen: v5e
topology: v5e:2x2
jax: 0.10.0
libtpu: 0.0.40
codegen_flags: <defaults>
</compile_context>

<pallas_src>
import functools
import itertools

import numpy as np
import jax
import jax.numpy as jnp
from jax import lax
from jax.experimental import pallas as pl
from jax.experimental.pallas import tpu as pltpu

try:
    from scipy.optimize import linear_sum_assignment as _scipy_lsa
except Exception:  # pragma: no cover - scipy optional
    _scipy_lsa = None

_NEG_PAD = -1.0e4   # sigmoid -> 0, softplus -> 0, exp -> 0 (exact f32 underflow)


def _round_up(x, m):
    return ((x + m - 1) // m) * m


# ----------------------------------------------------------------------------
# Pallas kernel: per-batch TRANSPOSED cost matrix C^T[t, q], reduced over point
# tiles with VMEM accumulators (flash-style).  Grid = (batch, q_tile, point_tile).
# ----------------------------------------------------------------------------
def _matcher_cost_kernel(logits_ref, onehot_ref, tsum_ref, mask_ref, tgt_ref,
                         out_ref, xt_sc, st_sc, sp_sc, sg_sc,
                         *, n_points, point_tile, w_class, w_mask, w_dice):
    pt = pl.program_id(2)
    last = pl.num_programs(2) - 1
    dn_last = (((1,), (1,)), ((), ()))    # contract last dims  (A · B^T)
    dn_first = (((0,), (0,)), ((), ()))   # contract first dims (A^T · B): the point axis

    @pl.when(pt == 0)
    def _init():
        xt_sc[...] = jnp.zeros_like(xt_sc)
        st_sc[...] = jnp.zeros_like(st_sc)
        sp_sc[...] = jnp.zeros_like(sp_sc)
        sg_sc[...] = jnp.zeros_like(sg_sc)
        # class cost: -softmax(logits)[q, label_t]; ignored targets carry an all-ones
        # one-hot row so the dot gives -sum(prob) = -1 exactly.  Written (pre-weighted)
        # directly into the resident output block; mask/dice terms added at finalize.
        lg = logits_ref[0].astype(jnp.float32)                         # (QT, C)
        m = jnp.max(lg, axis=-1, keepdims=True)
        e = jnp.exp(lg - m)
        prob = e / jnp.sum(e, axis=-1, keepdims=True)
        cls_t = -lax.dot_general(onehot_ref[0], prob, dn_last,
                                 preferred_element_type=jnp.float32)   # (Tp, QT)
        out_ref[0] = jnp.float32(w_class) * cls_t

    # ---- point-tile partial reductions --------------------------------------
    x = mask_ref[0].astype(jnp.float32)                                # (PT, QT) logits
    if n_points % point_tile != 0:
        # ragged last tile: neutralize rows past P (HBM pad region is undefined)
        pid = pt * point_tile + lax.broadcasted_iota(jnp.int32, x.shape, 0)
        x = jnp.where(pid < n_points, x, jnp.float32(_NEG_PAD))
    t = tgt_ref[0].astype(jnp.float32)                                 # (PT, Tp) binary

    ax = jnp.abs(x)
    ex = jnp.exp(-ax)                                                  # EUP, reused
    softplus_x = jnp.maximum(x, 0.0) + jnp.log(1.0 + ex)              # BCE(x, 0)
    r = pl.reciprocal(1.0 + ex, approx=True)                          # EUP vrcp
    sig = jnp.where(x >= 0.0, r, ex * r)                              # stable sigmoid(x)

    xt_sc[...] += lax.dot_general(t, x, dn_first, preferred_element_type=jnp.float32)
    st_sc[...] += lax.dot_general(t, sig, dn_first, preferred_element_type=jnp.float32)
    sp_sc[...] += jnp.sum(softplus_x, axis=0, keepdims=True)           # (1, QT)
    sg_sc[...] += jnp.sum(sig, axis=0, keepdims=True)                  # (1, QT)

    # ---- finalize -------------------------------------------------------------
    @pl.when(pt == last)
    def _finalize():
        inv_p = jnp.float32(1.0 / n_points)
        # BCE(x,1)@t^T + BCE(x,0)@(1-t)^T == rowsum(softplus(x)) - x@t^T  (exact)
        cost_mask_t = (sp_sc[...] - xt_sc[...]) * inv_p                 # (Tp, QT)
        numerator = 2.0 * st_sc[...]
        denominator = sg_sc[...] + tsum_ref[0]                          # (1,QT)+(Tp,1)
        cost_dice_t = 1.0 - (numerator + 1.0) / (denominator + 1.0)
        out_ref[0] += (jnp.float32(w_mask) * cost_mask_t
                       + jnp.float32(w_dice) * cost_dice_t)


# ----------------------------------------------------------------------------
# Wrapper: native-layout inputs, one pallas_call, one D2H transfer.
# ----------------------------------------------------------------------------
def compute_cost_matrices(pred_logits, pred_masks, labels, tgt_masks,
                          cost_class=1.0, cost_mask=1.0, cost_dice=1.0,
                          ignore_label=253, point_tile=2048):
    """pred_logits: (bs, Q, C); pred_masks: (bs, P, Q) NATIVE layout (mask logits);
    labels[b]: (T_b,) int; tgt_masks[b]: (T_b, P) binary.
    Returns a list of host numpy (Q, T_b) cost matrices (single D2H transfer)."""
    bs, Q, C = pred_logits.shape
    P = pred_masks.shape[1]
    assert pred_masks.shape == (bs, P, Q), pred_masks.shape

    T_real = [int(np.asarray(l).shape[0]) for l in labels]
    Tp = _round_up(max(max(T_real), 1), 128)

    PT = min(int(point_tile), _round_up(P, 8))
    n_pt = int(pl.cdiv(P, PT))
    Pp = n_pt * PT

    # Optional query tiling (both v7x TCs busy at small bs) — only when it divides
    # cleanly so pred_masks stays un-padded in HBM.
    QT = 128 if (Q % 128 == 0 and Q > 128) else Q
    n_q = Q // QT

    # ---- small host-built side inputs (targets are ragged per batch element) ----
    onehot = np.zeros((bs, Tp, C), np.float32)
    tsum = np.zeros((bs, Tp, 1), np.float32)
    tgt_np = np.zeros((bs, Pp, Tp), np.float32)
    for b in range(bs):
        lab = np.array(np.asarray(labels[b]), dtype=np.int64)
        ign = lab == ignore_label
        rows = np.arange(T_real[b])
        onehot[b, rows[~ign], lab[~ign]] = 1.0
        onehot[b, rows[ign], :] = 1.0            # all-ones row -> -sum(prob) = -1 exactly
        m = np.asarray(tgt_masks[b], np.float32)
        tsum[b, :T_real[b], 0] = m.sum(-1)
        tgt_np[b, :P, :T_real[b]] = m.T          # points-major layout for the kernel
    onehot = jnp.asarray(onehot)
    tsum = jnp.asarray(tsum)
    tgt = jnp.asarray(tgt_np, dtype=jnp.bfloat16)   # exact for {0,1}; halves HBM/H2D
    # TODO(synk): for large P / frequent calls, build tgt/onehot/tsum on device (or
    # cache across calls) instead of per-call numpy + host->device copies.

    kernel = functools.partial(_matcher_cost_kernel,
                               n_points=P, point_tile=PT,
                               w_class=float(cost_class),
                               w_mask=float(cost_mask),
                               w_dice=float(cost_dice))

    # VMEM working-set estimate (double-buffered streams + resident blocks + scratch)
    lane = 128
    est = (2 * PT * max(QT, lane) * 4            # mask-logit tile (f32)
           + 2 * PT * Tp * 2                     # target tile (bf16)
           + 2 * max(QT, 8) * max(C, lane) * 4   # logits block
           + 2 * Tp * max(C, lane) * 4           # one-hot block
           + 2 * Tp * lane * 4                   # target-sum block
           + 2 * Tp * max(QT, lane) * 4          # output block
           + 2 * Tp * max(QT, lane) * 4          # xt/st scratch
           + 2 * 8 * max(QT, lane) * 4)          # sp/sg scratch
    vmem_limit = int(min(max(2 * est, 32 * 1024 * 1024), 64 * 1024 * 1024))

    cost_t = pl.pallas_call(
        kernel,
        out_shape=jax.ShapeDtypeStruct((bs, Tp, Q), jnp.float32),
        grid_spec=pltpu.PrefetchScalarGridSpec(
            num_scalar_prefetch=0,
            grid=(bs, n_q, n_pt),
            in_specs=[
                pl.BlockSpec((1, QT, C), lambda b, q, p: (b, q, 0)),    # pred_logits
                pl.BlockSpec((1, Tp, C), lambda b, q, p: (b, 0, 0)),    # one-hot (+ignore)
                pl.BlockSpec((1, Tp, 1), lambda b, q, p: (b, 0, 0)),    # per-target sums
                pl.BlockSpec((1, PT, QT), lambda b, q, p: (b, p, q)),   # mask logits (native)
                pl.BlockSpec((1, PT, Tp), lambda b, q, p: (b, p, 0)),   # targets (bf16)
            ],
            out_specs=pl.BlockSpec((1, Tp, QT), lambda b, q, p: (b, 0, q)),
            scratch_shapes=[
                pltpu.VMEM((Tp, QT), jnp.float32),   # acc: t^T @ x
                pltpu.VMEM((Tp, QT), jnp.float32),   # acc: t^T @ sigmoid(x)
                pltpu.VMEM((1, QT), jnp.float32),    # acc: colsum softplus(x)
                pltpu.VMEM((1, QT), jnp.float32),    # acc: colsum sigmoid(x)
            ],
        ),
        compiler_params=pltpu.CompilerParams(
            dimension_semantics=("parallel", "parallel", "arbitrary"),
            vmem_limit_bytes=vmem_limit),
    )(pred_logits, onehot, tsum, pred_masks, tgt)

    cost_t = jax.block_until_ready(cost_t)
    cost_np = np.asarray(jax.device_get(cost_t))          # single D2H transfer
    # kernel produced C^T (targets x queries); hand back (Q, T_b) per batch element.
    return [np.ascontiguousarray(cost_np[b, :T_real[b], :].T) for b in range(bs)]


# ----------------------------------------------------------------------------
# Host-side Hungarian (scipy if available, pure-python fallback) — the original
# also runs linear_sum_assignment on CPU after C.cpu().
# ----------------------------------------------------------------------------
def _hungarian_rect(cost):
    """Classic O(n^2 m) Hungarian with potentials; cost: (n, m), n <= m."""
    n, m = cost.shape
    INF = np.inf
    u = np.zeros(n + 1)
    v = np.zeros(m + 1)
    p = np.zeros(m + 1, dtype=np.int64)
    way = np.zeros(m + 1, dtype=np.int64)
    for i in range(1, n + 1):
        p[0] = i
        j0 = 0
        minv = np.full(m + 1, INF)
        used = np.zeros(m + 1, dtype=bool)
        while True:
            used[j0] = True
            i0 = p[j0]
            delta = INF
            j1 = 0
            for j in range(1, m + 1):
                if not used[j]:
                    cur = cost[i0 - 1, j - 1] - u[i0] - v[j]
                    if cur < minv[j]:
                        minv[j] = cur
                        way[j] = j0
                    if minv[j] < delta:
                        delta = minv[j]
                        j1 = j
            for j in range(m + 1):
                if used[j]:
                    u[p[j]] += delta
                    v[j] -= delta
                else:
                    minv[j] -= delta
            j0 = j1
            if p[j0] == 0:
                break
        while True:
            j1 = way[j0]
            p[j0] = p[j1]
            j0 = j1
            if j0 == 0:
                break
    col4row = np.zeros(n, dtype=np.int64)
    for j in range(1, m + 1):
        if p[j] != 0:
            col4row[p[j] - 1] = j - 1
    return col4row


def linear_sum_assignment_np(cost):
    cost = np.asarray(cost, dtype=np.float64)
    if cost.shape[0] > cost.shape[1]:
        col4row = _hungarian_rect(cost.T)
        row_ind, col_ind = col4row, np.arange(cost.shape[1], dtype=np.int64)
    else:
        col4row = _hungarian_rect(cost)
        row_ind, col_ind = np.arange(cost.shape[0], dtype=np.int64), col4row
    order = np.argsort(row_ind)
    return row_ind[order], col_ind[order]


def _lsa(cost):
    if _scipy_lsa is not None:
        i, j = _scipy_lsa(cost)
        return np.asarray(i, np.int64), np.asarray(j, np.int64)
    return linear_sum_assignment_np(cost)


# ----------------------------------------------------------------------------
# Matcher module (forward semantics of the PyTorch HungarianMatcher).
# ----------------------------------------------------------------------------
class HungarianMatcher:
    def __init__(self, cost_class=1.0, cost_mask=1.0, cost_dice=1.0, num_points=-1):
        assert cost_class != 0 or cost_mask != 0 or cost_dice != 0, "all costs cant be 0"
        self.cost_class = cost_class
        self.cost_mask = cost_mask
        self.cost_dice = cost_dice
        self.num_points = num_points

    def __call__(self, outputs, targets, mask_type="masks"):
        pred_logits = outputs["pred_logits"]     # (bs, Q, C)
        pred_masks = outputs["pred_masks"]       # (bs, P, Q) — consumed natively
        # TODO(synk): num_points != -1 (fractional torch.randperm point subsampling)
        # is a host-side RNG gather; only the all-points (num_points == -1) path is
        # implemented here.
        labels = [t["labels"] for t in targets]
        masks = [t[mask_type] for t in targets]
        costs = compute_cost_matrices(pred_logits, pred_masks, labels, masks,
                                      self.cost_class, self.cost_mask, self.cost_dice)
        indices = []
        for Cb in costs:
            i, j = _lsa(np.asarray(Cb, dtype=np.float64))
            indices.append((np.asarray(i, np.int64), np.asarray(j, np.int64)))
        return indices

    forward = __call__


# ----------------------------------------------------------------------------
# Pure-JAX reference mirroring the PyTorch math exactly (for validation).
# ----------------------------------------------------------------------------
def cost_matrix_ref(pred_logits_b, out_mask_b, labels_b, tgt_mask_b,
                    w_class=1.0, w_mask=1.0, w_dice=1.0, ignore_label=253):
    out_prob = jax.nn.softmax(pred_logits_b.astype(jnp.float32), axis=-1)
    labels_b = jnp.asarray(labels_b)
    filt = labels_b == ignore_label
    tgt_ids = jnp.where(filt, 0, labels_b)
    cost_class = -out_prob[:, tgt_ids]
    cost_class = jnp.where(filt[None, :], -1.0, cost_class)

    x = out_mask_b.astype(jnp.float32)
    t = tgt_mask_b.astype(jnp.float32)
    hw = x.shape[1]
    stable = jnp.log1p(jnp.exp(-jnp.abs(x)))
    pos = jnp.maximum(x, 0.0) - x + stable      # BCE-with-logits(x, 1)
    neg = jnp.maximum(x, 0.0) + stable          # BCE-with-logits(x, 0)
    cost_mask = (pos @ t.T + neg @ (1.0 - t).T) / hw

    sig = jax.nn.sigmoid(x)
    numerator = 2.0 * (sig @ t.T)
    denominator = sig.sum(-1)[:, None] + t.sum(-1)[None, :]
    cost_dice = 1.0 - (numerator + 1.0) / (denominator + 1.0)
    return w_mask * cost_mask + w_class * cost_class + w_dice * cost_dice


if __name__ == "__main__":
    key = jax.random.PRNGKey(0)
    k1, k2, k3, k4 = jax.random.split(key, 4)

    bs, Q, C, P = 2, 16, 8, 200
    pred_logits = jax.random.normal(k1, (bs, Q, C), jnp.float32)
    pred_masks = jax.random.normal(k2, (bs, P, Q), jnp.float32)   # native (bs, P, Q)

    t_counts = [3, 4]
    label_keys = jax.random.split(k3, bs)
    mask_keys = jax.random.split(k4, bs)
    targets = []
    for b in range(bs):
        labs = np.array(jax.random.randint(label_keys[b], (t_counts[b],), 0, C))  # writable copy
        if b == 0:
            labs[-1] = 253                                        # exercise ignore-label path
        masks = jax.random.bernoulli(mask_keys[b], 0.3, (t_counts[b], P)).astype(jnp.float32)
        targets.append({"labels": jnp.asarray(labs), "masks": masks})

    labels = [t["labels"] for t in targets]
    tmasks = [t["masks"] for t in targets]

    # --- Pallas cost matrices (single kernel launch, single D2H) ---
    costs = compute_cost_matrices(pred_logits, pred_masks, labels, tmasks,
                                  cost_class=1.0, cost_mask=1.0, cost_dice=1.0)

    # --- validate against the pure-JAX reference of the PyTorch formulas ---
    out_masks_ref = jnp.swapaxes(pred_masks, 1, 2)            # reference only
    refs = []
    for b in range(bs):
        ref = np.asarray(cost_matrix_ref(pred_logits[b], out_masks_ref[b],
                                         labels[b], tmasks[b], 1.0, 1.0, 1.0))
        refs.append(ref)
        err = float(np.max(np.abs(costs[b] - ref)))
        # approx-reciprocal sigmoid (EUP vrcp) perturbs the dice term by O(1e-4)
        assert err < 5e-3, (b, err)

    # --- full matcher forward (Hungarian on host) + optimality checks ---
    matcher = HungarianMatcher(cost_class=1.0, cost_mask=1.0, cost_dice=1.0, num_points=-1)
    indices = matcher({"pred_logits": pred_logits, "pred_masks": pred_masks},
                      targets, "masks")
    for b, (qi, ti) in enumerate(indices):
        assert len(qi) == len(ti) == min(Q, t_counts[b])
        Cnp = np.asarray(costs[b], dtype=np.float64)
        hung_total = float(Cnp[qi, ti].sum())
        best = min(sum(Cnp[perm[t], t] for t in range(t_counts[b]))
                   for perm in itertools.permutations(range(Q), t_counts[b]))
        assert abs(hung_total - best) < 1e-5, (b, hung_total, best)
        # assignment quality parity against the exact f32 reference cost
        Rnp = np.asarray(refs[b], dtype=np.float64)
        ri, rj = _lsa(Rnp)
        assert float(Rnp[qi, ti].sum()) <= float(Rnp[ri, rj].sum()) + 1e-2

    print("KERNEL_OK")
</pallas_src>

<mosaic_0001>
module attributes {stable_mosaic.version = 11 : i64} {
  func.func @_matcher_cost_kernel(%arg0: i32, %arg1: i32, %arg2: i32, %arg3: memref<1x16x8xf32, #tpu.memory_space<vmem>>, %arg4: memref<1x128x8xf32, #tpu.memory_space<vmem>>, %arg5: memref<1x128x1xf32, #tpu.memory_space<vmem>>, %arg6: memref<1x200x16xf32, #tpu.memory_space<vmem>>, %arg7: memref<1x200x128xbf16, #tpu.memory_space<vmem>>, %arg8: memref<1x128x16xf32, #tpu.memory_space<vmem>>, %arg9: memref<128x16xf32, #tpu.memory_space<vmem>>, %arg10: memref<128x16xf32, #tpu.memory_space<vmem>>, %arg11: memref<1x16xf32, #tpu.memory_space<vmem>>, %arg12: memref<1x16xf32, #tpu.memory_space<vmem>>) attributes {dimension_semantics = [#tpu.dimension_semantics<parallel>, #tpu.dimension_semantics<parallel>, #tpu.dimension_semantics<arbitrary>], iteration_bounds = array<i64: 2, 1, 1>, scalar_prefetch = 0 : i64, scratch_operands = 4 : i64, tpu.core_type = #tpu.core_type<tc>, window_params = [{transform_indices = @transform_0, window_bounds = array<i64: 1, 16, 8>}, {transform_indices = @transform_1, window_bounds = array<i64: 1, 128, 8>}, {transform_indices = @transform_2, window_bounds = array<i64: 1, 128, 1>}, {transform_indices = @transform_3, window_bounds = array<i64: 1, 200, 16>}, {transform_indices = @transform_4, window_bounds = array<i64: 1, 200, 128>}, {transform_indices = @transform_5, window_bounds = array<i64: 1, 128, 16>}]} {
    %c0_i32 = arith.constant 0 : i32
    %0 = arith.cmpi eq, %arg2, %c0_i32 : i32
    %1 = arith.extui %0 : i1 to i32
    %c0_i32_0 = arith.constant 0 : i32
    %2 = arith.cmpi ne, %1, %c0_i32_0 : i32
    scf.if %2 {
      %cst_32 = arith.constant 0.000000e+00 : f32
      %46 = vector.broadcast %cst_32 : f32 to vector<128x16xf32>
      %c0_33 = arith.constant 0 : index
      %c0_34 = arith.constant 0 : index
      %47 = vector.load %arg9[%c0_33, %c0_34] : memref<128x16xf32, #tpu.memory_space<vmem>>, vector<128x16xf32>
      tpu.vector_store %arg9[%c0_33, %c0_34], %46 {strides = array<i32>} : memref<128x16xf32, #tpu.memory_space<vmem>>, vector<128x16xf32>,
      %cst_35 = arith.constant 0.000000e+00 : f32
      %48 = vector.broadcast %cst_35 : f32 to vector<128x16xf32>
      %c0_36 = arith.constant 0 : index
      %c0_37 = arith.constant 0 : index
      %49 = vector.load %arg10[%c0_36, %c0_37] : memref<128x16xf32, #tpu.memory_space<vmem>>, vector<128x16xf32>
      tpu.vector_store %arg10[%c0_36, %c0_37], %48 {strides = array<i32>} : memref<128x16xf32, #tpu.memory_space<vmem>>, vector<128x16xf32>,
      %cst_38 = arith.constant 0.000000e+00 : f32
      %50 = vector.broadcast %cst_38 : f32 to vector<1x16xf32>
      %c0_39 = arith.constant 0 : index
      %c0_40 = arith.constant 0 : index
      %51 = vector.load %arg11[%c0_39, %c0_40] : memref<1x16xf32, #tpu.memory_space<vmem>>, vector<1x16xf32>
      tpu.vector_store %arg11[%c0_39, %c0_40], %50 {strides = array<i32>} : memref<1x16xf32, #tpu.memory_space<vmem>>, vector<1x16xf32>,
      %cst_41 = arith.constant 0.000000e+00 : f32
      %52 = vector.broadcast %cst_41 : f32 to vector<1x16xf32>
      %c0_42 = arith.constant 0 : index
      %c0_43 = arith.constant 0 : index
      %53 = vector.load %arg12[%c0_42, %c0_43] : memref<1x16xf32, #tpu.memory_space<vmem>>, vector<1x16xf32>
      tpu.vector_store %arg12[%c0_42, %c0_43], %52 {strides = array<i32>} : memref<1x16xf32, #tpu.memory_space<vmem>>, vector<1x16xf32>,
      %c0_44 = arith.constant 0 : index
      %c0_45 = arith.constant 0 : index
      %c0_46 = arith.constant 0 : index
      %54 = vector.load %arg3[%c0_44, %c0_45, %c0_46] : memref<1x16x8xf32, #tpu.memory_space<vmem>>, vector<1x16x8xf32>
      %55 = vector.shape_cast %54 : vector<1x16x8xf32> to vector<16x8xf32>
      %cst_47 = arith.constant dense<0xFF800000> : vector<16xf32>
      %56 = vector.multi_reduction <maximumf>, %55, %cst_47 [1] : vector<16x8xf32> to vector<16xf32>
      %57 = vector.shape_cast %56 : vector<16xf32> to vector<16x1xf32>
      %58 = vector.broadcast %57 : vector<16x1xf32> to vector<16x8xf32>
      %59 = arith.subf %55, %58 : vector<16x8xf32>
      %60 = math.exp %59 : vector<16x8xf32>
      %cst_48 = arith.constant dense<0.000000e+00> : vector<16xf32>
      %61 = vector.multi_reduction <add>, %60, %cst_48 [1] : vector<16x8xf32> to vector<16xf32>
      %62 = vector.shape_cast %61 : vector<16xf32> to vector<16x1xf32>
      %63 = vector.broadcast %62 : vector<16x1xf32> to vector<16x8xf32>
      %64 = arith.divf %60, %63 : vector<16x8xf32>
      %c0_49 = arith.constant 0 : index
      %c0_50 = arith.constant 0 : index
      %c0_51 = arith.constant 0 : index
      %65 = vector.load %arg4[%c0_49, %c0_50, %c0_51] : memref<1x128x8xf32, #tpu.memory_space<vmem>>, vector<1x128x8xf32>
      %66 = vector.shape_cast %65 : vector<1x128x8xf32> to vector<128x8xf32>
      %cst_52 = arith.constant dense<0.000000e+00> : vector<128x16xf32>
      %67 = tpu.matmul %66, %64, %cst_52 {dimension_numbers = #tpu.dot_dimension_numbers<[1], [1], [0], [0], [0, 0, 1, 0], [], []>} : vector<128x8xf32>, vector<16x8xf32>, vector<128x16xf32> -> vector<128x16xf32>
      %cst_53 = arith.constant 0.000000e+00 : f32
      %68 = vector.broadcast %cst_53 : f32 to vector<128x16xf32>
      %69 = arith.subf %68, %67 : vector<128x16xf32>
      %cst_54 = arith.constant 1.000000e+00 : f32
      %70 = vector.broadcast %cst_54 : f32 to vector<128x16xf32>
      %71 = arith.mulf %70, %69 : vector<128x16xf32>
      %c0_55 = arith.constant 0 : index
      %c0_56 = arith.constant 0 : index
      %c0_57 = arith.constant 0 : index
      %72 = vector.load %arg8[%c0_55, %c0_56, %c0_57] : memref<1x128x16xf32, #tpu.memory_space<vmem>>, vector<1x128x16xf32>
      %73 = vector.shape_cast %72 : vector<1x128x16xf32> to vector<128x16xf32>
      %74 = vector.shape_cast %71 : vector<128x16xf32> to vector<1x128x16xf32>
      tpu.vector_store %arg8[%c0_55, %c0_56, %c0_57], %74 {strides = array<i32>} : memref<1x128x16xf32, #tpu.memory_space<vmem>>, vector<1x128x16xf32>,
    } else {
    }
    %c0 = arith.constant 0 : index
    %c0_1 = arith.constant 0 : index
    %c0_2 = arith.constant 0 : index
    %3 = vector.load %arg6[%c0, %c0_1, %c0_2] : memref<1x200x16xf32, #tpu.memory_space<vmem>>, vector<1x200x16xf32>
    %4 = vector.shape_cast %3 : vector<1x200x16xf32> to vector<200x16xf32>
    %c0_3 = arith.constant 0 : index
    %c0_4 = arith.constant 0 : index
    %c0_5 = arith.constant 0 : index
    %5 = vector.load %arg7[%c0_3, %c0_4, %c0_5] : memref<1x200x128xbf16, #tpu.memory_space<vmem>>, vector<1x200x128xbf16>
    %6 = vector.shape_cast %5 : vector<1x200x128xbf16> to vector<200x128xbf16>
    %7 = arith.extf %6 : vector<200x128xbf16> to vector<200x128xf32>
    %8 = math.absf %4 : vector<200x16xf32>
    %cst = arith.constant 0.000000e+00 : f32
    %9 = vector.broadcast %cst : f32 to vector<200x16xf32>
    %10 = arith.subf %9, %8 : vector<200x16xf32>
    %11 = math.exp %10 : vector<200x16xf32>
    %cst_6 = arith.constant 0.000000e+00 : f32
    %12 = vector.broadcast %cst_6 : f32 to vector<200x16xf32>
    %13 = arith.maximumf %4, %12 : vector<200x16xf32>
    %cst_7 = arith.constant 1.000000e+00 : f32
    %14 = vector.broadcast %cst_7 : f32 to vector<200x16xf32>
    %15 = arith.addf %14, %11 : vector<200x16xf32>
    %16 = math.log %15 : vector<200x16xf32>
    %17 = arith.addf %13, %16 : vector<200x16xf32>
    %cst_8 = arith.constant 1.000000e+00 : f32
    %18 = vector.broadcast %cst_8 : f32 to vector<200x16xf32>
    %19 = arith.addf %18, %11 : vector<200x16xf32>
    %20 = tpu.reciprocal %19 {approx = true} : vector<200x16xf32> -> vector<200x16xf32>
    %cst_9 = arith.constant 0.000000e+00 : f32
    %21 = vector.broadcast %cst_9 : f32 to vector<200x16xf32>
    %22 = arith.cmpf oge, %4, %21 : vector<200x16xf32>
    %23 = arith.mulf %11, %20 : vector<200x16xf32>
    %24 = arith.select %22, %20, %23 : vector<200x16xi1>, vector<200x16xf32>
    %c0_10 = arith.constant 0 : index
    %c0_11 = arith.constant 0 : index
    %25 = vector.load %arg9[%c0_10, %c0_11] : memref<128x16xf32, #tpu.memory_space<vmem>>, vector<128x16xf32>
    %cst_12 = arith.constant dense<0.000000e+00> : vector<128x16xf32>
    %26 = tpu.matmul %7, %4, %cst_12 {dimension_numbers = #tpu.dot_dimension_numbers<[0], [0], [1], [1], [0, 1, 1, 1], [], []>} : vector<200x128xf32>, vector<200x16xf32>, vector<128x16xf32> -> vector<128x16xf32>
    %27 = arith.addf %25, %26 : vector<128x16xf32>
    %c0_13 = arith.constant 0 : index
    %c0_14 = arith.constant 0 : index
    %28 = vector.load %arg9[%c0_13, %c0_14] : memref<128x16xf32, #tpu.memory_space<vmem>>, vector<128x16xf32>
    tpu.vector_store %arg9[%c0_13, %c0_14], %27 {strides = array<i32>} : memref<128x16xf32, #tpu.memory_space<vmem>>, vector<128x16xf32>,
    %c0_15 = arith.constant 0 : index
    %c0_16 = arith.constant 0 : index
    %29 = vector.load %arg10[%c0_15, %c0_16] : memref<128x16xf32, #tpu.memory_space<vmem>>, vector<128x16xf32>
    %cst_17 = arith.constant dense<0.000000e+00> : vector<128x16xf32>
    %30 = tpu.matmul %7, %24, %cst_17 {dimension_numbers = #tpu.dot_dimension_numbers<[0], [0], [1], [1], [0, 1, 1, 1], [], []>} : vector<200x128xf32>, vector<200x16xf32>, vector<128x16xf32> -> vector<128x16xf32>
    %31 = arith.addf %29, %30 : vector<128x16xf32>
    %c0_18 = arith.constant 0 : index
    %c0_19 = arith.constant 0 : index
    %32 = vector.load %arg10[%c0_18, %c0_19] : memref<128x16xf32, #tpu.memory_space<vmem>>, vector<128x16xf32>
    tpu.vector_store %arg10[%c0_18, %c0_19], %31 {strides = array<i32>} : memref<128x16xf32, #tpu.memory_space<vmem>>, vector<128x16xf32>,
    %c0_20 = arith.constant 0 : index
    %c0_21 = arith.constant 0 : index
    %33 = vector.load %arg11[%c0_20, %c0_21] : memref<1x16xf32, #tpu.memory_space<vmem>>, vector<1x16xf32>
    %cst_22 = arith.constant dense<0.000000e+00> : vector<16xf32>
    %34 = vector.multi_reduction <add>, %17, %cst_22 [0] : vector<200x16xf32> to vector<16xf32>
    %35 = vector.shape_cast %34 : vector<16xf32> to vector<1x16xf32>
    %36 = arith.addf %33, %35 : vector<1x16xf32>
    %c0_23 = arith.constant 0 : index
    %c0_24 = arith.constant 0 : index
    %37 = vector.load %arg11[%c0_23, %c0_24] : memref<1x16xf32, #tpu.memory_space<vmem>>, vector<1x16xf32>
    tpu.vector_store %arg11[%c0_23, %c0_24], %36 {strides = array<i32>} : memref<1x16xf32, #tpu.memory_space<vmem>>, vector<1x16xf32>,
    %c0_25 = arith.constant 0 : index
    %c0_26 = arith.constant 0 : index
    %38 = vector.load %arg12[%c0_25, %c0_26] : memref<1x16xf32, #tpu.memory_space<vmem>>, vector<1x16xf32>
    %cst_27 = arith.constant dense<0.000000e+00> : vector<16xf32>
    %39 = vector.multi_reduction <add>, %24, %cst_27 [0] : vector<200x16xf32> to vector<16xf32>
    %40 = vector.shape_cast %39 : vector<16xf32> to vector<1x16xf32>
    %41 = arith.addf %38, %40 : vector<1x16xf32>
    %c0_28 = arith.constant 0 : index
    %c0_29 = arith.constant 0 : index
    %42 = vector.load %arg12[%c0_28, %c0_29] : memref<1x16xf32, #tpu.memory_space<vmem>>, vector<1x16xf32>
    tpu.vector_store %arg12[%c0_28, %c0_29], %41 {strides = array<i32>} : memref<1x16xf32, #tpu.memory_space<vmem>>, vector<1x16xf32>,
    %c0_i32_30 = arith.constant 0 : i32
    %43 = arith.cmpi eq, %arg2, %c0_i32_30 : i32
    %44 = arith.extui %43 : i1 to i32
    %c0_i32_31 = arith.constant 0 : i32
    %45 = arith.cmpi ne, %44, %c0_i32_31 : i32
    scf.if %45 {
      %c0_32 = arith.constant 0 : index
      %c0_33 = arith.constant 0 : index
      %46 = vector.load %arg11[%c0_32, %c0_33] : memref<1x16xf32, #tpu.memory_space<vmem>>, vector<1x16xf32>
      %c0_34 = arith.constant 0 : index
      %c0_35 = arith.constant 0 : index
      %47 = vector.load %arg9[%c0_34, %c0_35] : memref<128x16xf32, #tpu.memory_space<vmem>>, vector<128x16xf32>
      %48 = vector.broadcast %46 : vector<1x16xf32> to vector<128x16xf32>
      %49 = arith.subf %48, %47 : vector<128x16xf32>
      %cst_36 = arith.constant 5.000000e-03 : f32
      %50 = vector.broadcast %cst_36 : f32 to vector<128x16xf32>
      %51 = arith.mulf %49, %50 : vector<128x16xf32>
      %c0_37 = arith.constant 0 : index
      %c0_38 = arith.constant 0 : index
      %52 = vector.load %arg10[%c0_37, %c0_38] : memref<128x16xf32, #tpu.memory_space<vmem>>, vector<128x16xf32>
      %cst_39 = arith.constant 2.000000e+00 : f32
      %53 = vector.broadcast %cst_39 : f32 to vector<128x16xf32>
      %54 = arith.mulf %53, %52 : vector<128x16xf32>
      %c0_40 = arith.constant 0 : index
      %c0_41 = arith.constant 0 : index
      %55 = vector.load %arg12[%c0_40, %c0_41] : memref<1x16xf32, #tpu.memory_space<vmem>>, vector<1x16xf32>
      %c0_42 = arith.constant 0 : index
      %c0_43 = arith.constant 0 : index
      %c0_44 = arith.constant 0 : index
      %56 = vector.load %arg5[%c0_42, %c0_43, %c0_44] : memref<1x128x1xf32, #tpu.memory_space<vmem>>, vector<1x128x1xf32>
      %57 = vector.shape_cast %56 : vector<1x128x1xf32> to vector<128x1xf32>
      %58 = vector.broadcast %55 : vector<1x16xf32> to vector<128x16xf32>
      %59 = vector.broadcast %57 : vector<128x1xf32> to vector<128x16xf32>
      %60 = arith.addf %58, %59 : vector<128x16xf32>
      %cst_45 = arith.constant 1.000000e+00 : f32
      %61 = vector.broadcast %cst_45 : f32 to vector<128x16xf32>
      %62 = arith.addf %54, %61 : vector<128x16xf32>
      %cst_46 = arith.constant 1.000000e+00 : f32
      %63 = vector.broadcast %cst_46 : f32 to vector<128x16xf32>
      %64 = arith.addf %60, %63 : vector<128x16xf32>
      %65 = arith.divf %62, %64 : vector<128x16xf32>
      %cst_47 = arith.constant 1.000000e+00 : f32
      %66 = vector.broadcast %cst_47 : f32 to vector<128x16xf32>
      %67 = arith.subf %66, %65 : vector<128x16xf32>
      %c0_48 = arith.constant 0 : index
      %c0_49 = arith.constant 0 : index
      %c0_50 = arith.constant 0 : index
      %68 = vector.load %arg8[%c0_48, %c0_49, %c0_50] : memref<1x128x16xf32, #tpu.memory_space<vmem>>, vector<1x128x16xf32>
      %69 = vector.shape_cast %68 : vector<1x128x16xf32> to vector<128x16xf32>
      %cst_51 = arith.constant 1.000000e+00 : f32
      %70 = vector.broadcast %cst_51 : f32 to vector<128x16xf32>
      %71 = arith.mulf %70, %51 : vector<128x16xf32>
      %cst_52 = arith.constant 1.000000e+00 : f32
      %72 = vector.broadcast %cst_52 : f32 to vector<128x16xf32>
      %73 = arith.mulf %72, %67 : vector<128x16xf32>
      %74 = arith.addf %71, %73 : vector<128x16xf32>
      %75 = arith.addf %69, %74 : vector<128x16xf32>
      %c0_53 = arith.constant 0 : index
      %c0_54 = arith.constant 0 : index
      %c0_55 = arith.constant 0 : index
      %76 = vector.load %arg8[%c0_53, %c0_54, %c0_55] : memref<1x128x16xf32, #tpu.memory_space<vmem>>, vector<1x128x16xf32>
      %77 = vector.shape_cast %76 : vector<1x128x16xf32> to vector<128x16xf32>
      %78 = vector.shape_cast %75 : vector<128x16xf32> to vector<1x128x16xf32>
      tpu.vector_store %arg8[%c0_53, %c0_54, %c0_55], %78 {strides = array<i32>} : memref<1x128x16xf32, #tpu.memory_space<vmem>>, vector<1x128x16xf32>,
    } else {
    }
    return
  }
  func.func @transform_0(%arg0: i32, %arg1: i32, %arg2: i32) -> (i32, i32, i32) {
    %c0_i32 = arith.constant 0 : i32
    %c0_i32_0 = arith.constant 0 : i32
    return %arg0, %arg1, %c0_i32 : i32, i32, i32
  }
  func.func @transform_1(%arg0: i32, %arg1: i32, %arg2: i32) -> (i32, i32, i32) {
    %c0_i32 = arith.constant 0 : i32
    %c0_i32_0 = arith.constant 0 : i32
    %c0_i32_1 = arith.constant 0 : i32
    return %arg0, %c0_i32, %c0_i32_0 : i32, i32, i32
  }
  func.func @transform_2(%arg0: i32, %arg1: i32, %arg2: i32) -> (i32, i32, i32) {
    %c0_i32 = arith.constant 0 : i32
    %c0_i32_0 = arith.constant 0 : i32
    %c0_i32_1 = arith.constant 0 : i32
    return %arg0, %c0_i32, %c0_i32_0 : i32, i32, i32
  }
  func.func @transform_3(%arg0: i32, %arg1: i32, %arg2: i32) -> (i32, i32, i32) {
    %c0_i32 = arith.constant 0 : i32
    return %arg0, %arg2, %arg1 : i32, i32, i32
  }
  func.func @transform_4(%arg0: i32, %arg1: i32, %arg2: i32) -> (i32, i32, i32) {
    %c0_i32 = arith.constant 0 : i32
    %c0_i32_0 = arith.constant 0 : i32
    return %arg0, %arg2, %c0_i32 : i32, i32, i32
  }
  func.func @transform_5(%arg0: i32, %arg1: i32, %arg2: i32) -> (i32, i32, i32) {
    %c0_i32 = arith.constant 0 : i32
    %c0_i32_0 = arith.constant 0 : i32
    return %arg0, %c0_i32, %arg1 : i32, i32, i32
  }
}

</mosaic_0001>

<bundles_post_ra>
// kernel: tpu_custom_call.1
= control target key start
LH: loop header
LB: loop body
LE: loop exit
PB: predicated region body
PF: predicated region fallthrough
CT: control target
= control target key end

     0   :  { %s2762_s18 = smov 0   ;;  %s2764_s19 = smov 0   ;;  %s4243_s0 = inlined_call_operand.vmem [shape: f32[2,16,8], index: 0, kind: input, shape index: {}]   ;;  %s4244_s1 = inlined_call_operand.vmem [shape: f32[2,128,8], index: 1, kind: input, shape index: {}]   ;;  %s4245_s2 = inlined_call_operand.vmem [shape: f32[2,128,1], index: 2, kind: input, shape index: {}]   ;;  %s4246_s3 = inlined_call_operand.vmem [shape: f32[2,200,16], index: 3, kind: input, shape index: {}]   ;;  %s4247_s4 = inlined_call_operand.vmem [shape: bf16[2,200,128], index: 4, kind: input, shape index: {}]   ;;  %s4248_s5 = inlined_call_operand.vmem [shape: f32[2,128,16], index: 5, kind: output, shape index: {}]  }
   0x1   :  { %s2766_s20 = smov 0  }
   0x2 LB: > { %s34_s21 = sadd.s32 1, %s2724_s19  ;;  %p2344_p0 = scmp.ge.s32.totalorder %s2728_s20, 1  ;;  %s2728_s20 = sphi %s2766_s20, %s15_s20   ;;  %s2724_s19 = sphi %s2764_s19, %s4346_s19   ;;  %s2720_s18 = sphi %s2762_s18, %s4345_s18  }
   0x3   : > { %p36_p1 = scmp.ge.s32.totalorder %s34_s21, 2  ;;  %p274_p2 = scmp.lt.s32.totalorder %s2728_s20, 3 }
   0x5   : > { %s4348_s21 = smov (%p36_p1, %s34_s21), 0  ;;  %p275_p3 = pnand %p2344_p0, %p274_p2 }
   0x7   : > { %278 = sbr.rel (%p275_p3) target bundleno = 628 (0x274), region = 40 }
   0xc   : > { %p341_p4 = scmp.lt.s32.totalorder %s2720_s18, 1  ;;  %vm433_vm0 = vcmask 64512   ;;  %v4249_v30 = vmov 0   ;;  %vm395_vm15 = vcmask 130048  }
   0xd   : > { %2507 = vset.pattern.permute.xlu1 %v4249_v30 }
   0xe   : > { %s4350_s18 = smov (!%p341_p4, %s2720_s18), 1 }
   0xf   : > { %s2407_s22 = sshll.u32 %s4350_s18, 4  ;;  %s2480_s26 = smul.u32 100, %s4350_s18 }
  0x10   : > { %s348_s25 = scalar_lea.vmem %s4243_s0, %s2407_s22  ;;  %s2812_s30 = sshll.u32 %s4350_s18, 7 }
  0x11   : > { %v432_v0 = vld [vmem:[%s348_s25 + $0x8] sm:$0xff]  ;;  %v431_v2 = vld [vmem:[%s348_s25] sm:$0xff]  ;;  %s2792_s29 = scalar_lea.vmem %s4247_s4, %s2480_s26  ;;  %s2818_s8 = scalar_lea.vmem %s4245_s2, %s2812_s30 }
  0x12   : > { %v437_v1 = vsel %vm433_vm0, %v432_v0, -inf  ;;  %v434_v3 = vsel %vm433_vm0, %v431_v2, -inf  ;;  %v2466_v4 = vld [vmem:[%s2792_s29 + $0x40] sm:$0xff]   ;;  %v2467_v12 = vld [vmem:[%s2792_s29 + $0x48] sm:$0xff]   ;;  %v2468_v24 = vld [vmem:[%s2792_s29 + $0x50] sm:$0xff]   ;;  %s2479_s9 = smul.u32 200, %s4350_s18  ;;  %s3003_s15 = scalar_lea.vmem %s4244_s1, %s2812_s30 }
  0x13   : > { %438 = vmax.xlane.f32.xlu0 %v437_v1  ;;  %v2412_v5 = vld [vmem:[%s2792_s29] sm:$0xff]   ;;  %v2445_v6 = vunpack.c.l.bf16 %v2466_v4  ;;  %v2446_v8 = vunpack.c.h.bf16 %v2466_v4  ;;  %v2459_v13 = vld [vmem:[%s2792_s29 + $0x8] sm:$0xff]   ;;  %v2449_v15 = vunpack.c.l.bf16 %v2467_v12  ;;  %v2450_v22 = vunpack.c.h.bf16 %v2467_v12  ;;  %v2460_v25 = vld [vmem:[%s2792_s29 + $0x10] sm:$0xff]   ;;  %s3614_s18 = scalar_lea.vmem %s4248_s5, %s2812_s30 }
  0x14   : > { %v2413_v7 = vunpack.c.l.bf16 %v2412_v5  ;;  %v2414_v9 = vunpack.c.h.bf16 %v2412_v5  ;;  %v2417_v16 = vunpack.c.l.bf16 %v2459_v13  ;;  %v2418_v23 = vunpack.c.h.bf16 %v2459_v13  ;;  %v2469_v33 = vld [vmem:[%s2792_s29 + $0x58] sm:$0xff]   ;;  %v1724_v37 = vld [vmem:[%s2818_s8] sm:$0xff]  ;;  %v1725_v42 = vld [vmem:[%s2818_s8 + $0x8] sm:$0xff]  ;;  %s2831_s12 = scalar_lea.vmem %s4246_s3, %s2479_s9 }
  0x15   : > { %v2453_v28 = vunpack.c.l.bf16 %v2468_v24  ;;  %v2421_v29 = vunpack.c.l.bf16 %v2460_v25  ;;  %v2454_v31 = vunpack.c.h.bf16 %v2468_v24  ;;  %v2422_v32 = vunpack.c.h.bf16 %v2460_v25  ;;  %v2461_v34 = vld [vmem:[%s2792_s29 + $0x18] sm:$0xff]   ;;  %v698_v40 = vld [vmem:[%s2792_s29 + $0x60] sm:$0xf]  ;;  %v1726_v45 = vld [vmem:[%s2818_s8 + $0x10] sm:$0xff] }
  0x16   : > { %1065 = vxpose.xlu2.b32.start [1/16] %v2413_v7, 128  ;;  %v2457_v35 = vunpack.c.l.bf16 %v2469_v33  ;;  %v2425_v36 = vunpack.c.l.bf16 %v2461_v34  ;;  %v2458_v38 = vunpack.c.h.bf16 %v2469_v33  ;;  %v2426_v39 = vunpack.c.h.bf16 %v2461_v34  ;;  %v2462_v41 = vld [vmem:[%s2792_s29 + $0x20] sm:$0xff]   ;;  %v2463_v47 = vld [vmem:[%s2792_s29 + $0x28] sm:$0xff]   ;;  %v2464_v50 = vld [vmem:[%s2792_s29 + $0x30] sm:$0xff]  }
  0x17   : > { %v723_v43 = vunpack.c.l.bf16 %v698_v40  ;;  %v2429_v44 = vunpack.c.l.bf16 %v2462_v41  ;;  %v2430_v46 = vunpack.c.h.bf16 %v2462_v41  ;;  %v2433_v48 = vunpack.c.l.bf16 %v2463_v47  ;;  %v1727_v52 = vld [vmem:[%s2818_s8 + $0x18] sm:$0xff]  ;;  %v2839_v55 = vld [vmem:[%s2831_s12 + $0x70] sm:$0xff]  ;;  %v2843_v59 = vld [vmem:[%s2831_s12 + $0x68] sm:$0xff] }
  0x18   : > { %v2434_v49 = vunpack.c.h.bf16 %v2463_v47  ;;  %v2437_v51 = vunpack.c.l.bf16 %v2464_v50  ;;  %v2835_v53 = vld [vmem:[%s2831_s12 + $0x78] sm:$0xff]  ;;  %v738_v57 = vand.u32 2147483647, %v2839_v55  ;;  %v2438_v58 = vunpack.c.h.bf16 %v2464_v50  ;;  %v1728_v60 = vld [vmem:[%s2818_s8 + $0x20] sm:$0xff]  ;;  %v2856_v7 = vld [vmem:[%s2831_s12 + $0x50] sm:$0xff] }
  0x19   : > { %v739_v54 = vand.u32 2147483647, %v2835_v53  ;;  %v737_v63 = vand.u32 2147483647, %v2843_v59  ;;  %v2852_v4 = vld [vmem:[%s2831_s12 + $0x58] sm:$0xff]  ;;  %v2861_v13 = vld [vmem:[%s2831_s12 + $0x48] sm:$0xff] }
  0x1a   : > { %v763_v62 = vsub.f32 0.0, %v738_v57  ;;  %v2879_v34 = vld [vmem:[%s2831_s12 + $0xc0] sm:$0xff]  ;;  %vm989_vm2 = vcmp.ge.f32.partialorder %v2835_v53, 0.0  ;;  %vm988_vm6 = vcmp.ge.f32.partialorder %v2839_v55, 0.0  ;;  %vm987_vm9 = vcmp.ge.f32.partialorder %v2843_v59, 0.0 }
  0x1b   : > { %435 = vmax.xlane.f32.xlu0 %v434_v3  ;;  %v764_v56 = vsub.f32 0.0, %v739_v54  ;;  %v839_v54 = vmax.f32 %v2835_v53, 0.0  ;;  %vm985_vm13 = vcmp.ge.f32.partialorder %v2852_v4, 0.0  ;;  %vm984_vm14 = vcmp.ge.f32.partialorder %v2856_v7, 0.0 }
  0x1c   : > { %v802_v1 = vmul.f32 1.442695, %v763_v62 }
  0x1d   : > { %v804_v61 = vmul.f32 1.442695, %v764_v56  ;;  %v1731_v56 = vld [vmem:[%s2818_s8 + $0x38] sm:$0xff] }
  0x1e   : > { %1066 = vxpose.xlu2.b32.cont [2/16] %v2414_v9, 128 }
  0x26   : > { %1067 = vxpose.xlu2.b32.cont [3/16] %v2417_v16, 128 }
  0x2e   : > { %1068 = vxpose.xlu2.b32.cont [4/16] %v2418_v23, 128 }
  0x36   : > { %1069 = vxpose.xlu2.b32.cont [5/16] %v2421_v29, 128 }
  0x3e   : > { %1070 = vxpose.xlu2.b32.cont [6/16] %v2422_v32, 128 }
  0x44   : > { %1097 = vxpose.xlu0.b32.start [1/9] (short) %v2445_v6, 128  ;;  %v735_v6 = vand.u32 2147483647, %v2852_v4 }
  0x46   : > { %1071 = vxpose.xlu2.b32.cont [7/16] %v2425_v36, 128  ;;  %v760_v12 = vsub.f32 0.0, %v735_v6  ;;  %v2882_v36 = vld [vmem:[%s2831_s12 + $0x38] sm:$0xff] }
  0x47   : > { %v731_v41 = vand.u32 2147483647, %v2882_v36 }
  0x48   : > { %v796_v23 = vmul.f32 1.442695, %v760_v12  ;;  %v838_v12 = vmax.f32 %v2839_v55, 0.0 }
  0x4c   : > { %1098 = vxpose.xlu0.b32.cont [2/9] (short) %v2446_v8, 128  ;;  %v2465_v8 = vld [vmem:[%s2792_s29 + $0x38] sm:$0xff]  }
  0x4e   : > { %1072 = vxpose.xlu2.b32.cont [8/16] %v2426_v39, 128 }
  0x54   : > { %1099 = vxpose.xlu0.b32.cont [3/9] (short) %v2449_v15, 128  ;;  %v733_v15 = vand.u32 2147483647, %v2861_v13 }
  0x56   : > { %1073 = vxpose.xlu2.b32.cont [9/16] %v2429_v44, 128  ;;  %v758_v24 = vsub.f32 0.0, %v733_v15 }
  0x5c   : > { %1100 = vxpose.xlu0.b32.cont [4/9] (short) %v2450_v22, 128 }
  0x5e   : > { %1074 = vxpose.xlu2.b32.cont [10/16] %v2430_v46, 128  ;;  %v756_v46 = vsub.f32 0.0, %v731_v41 }
  0x64   : > { %1101 = vxpose.xlu0.b32.cont [5/9] (short) %v2453_v28, 128 }
  0x66   : > { %1075 = vxpose.xlu2.b32.cont [11/16] %v2433_v48, 128 }
  0x6c   : > { %1102 = vxpose.xlu0.b32.cont [6/9] (short) %v2454_v31, 128  ;;  %v1730_v31 = vld [vmem:[%s2818_s8 + $0x30] sm:$0xff] }
  0x6e   : > { %1076 = vxpose.xlu2.b32.cont [12/16] %v2434_v49, 128  ;;  %v2898_v49 = vld [vmem:[%s2831_s12 + $0x30] sm:$0xff] }
  0x74   : > { %1103 = vxpose.xlu0.b32.cont [7/9] (short) %v2457_v35, 128  ;;  %v792_v35 = vmul.f32 1.442695, %v758_v24 }
  0x76   : > { %1077 = vxpose.xlu2.b32.cont [13/16] %v2437_v51, 128 }
  0x7c   : > { %1104 = vxpose.xlu0.b32.cont [8/9] (short) %v2458_v38, 128 }
  0x7e   : > { %1078 = vxpose.xlu2.b32.cont [14/16] %v2438_v58, 128  ;;  %v788_v58 = vmul.f32 1.442695, %v756_v46 }
  0x84   : > { %1105 = vxpose.xlu0.b32.end [9/9] (short) %v723_v43, 128 }
  0x86   : > { %v439_v10 = vpop.xlane.xlu0 %438 }
  0x87   : > { %v441_v11 = vsub.f32 %v432_v0, %v439_v10  ;;  %v2848_v0 = vld [vmem:[%s2831_s12 + $0x60] sm:$0xff]  ;;  %v734_v10 = vand.u32 2147483647, %v2856_v7 }
  0x88   : > { %v736_v3 = vand.u32 2147483647, %v2848_v0  ;;  %vm986_vm12 = vcmp.ge.f32.partialorder %v2848_v0, 0.0 }
  0x89   : > { %v444_v14 = vmul.f32 1.442695, %v441_v11  ;;  %v2441_v11 = vunpack.c.l.bf16 %v2465_v8 }
  0x8a   : > { %v761_v9 = vsub.f32 0.0, %v736_v3 }
  0x8b   : > { %2512 = vpow2.f32 %v444_v14  ;;  %v1729_v14 = vld [vmem:[%s2818_s8 + $0x28] sm:$0xff]  ;;  %1079 = vxpose.xlu2.b32.cont [15/16] %v2441_v11, 128 }
  0x8e   : > { %v436_v17 = vpop.xlane.xlu0 %435 }
  0x8f   : > { %v440_v18 = vsub.f32 %v431_v2, %v436_v17  ;;  %v762_v2 = vsub.f32 0.0, %v737_v63  ;;  %v759_v17 = vsub.f32 0.0, %v734_v10 }
  0x91   : > { %v2798_v19 = vpop.eup %2512  ;;  %v442_v20 = vmul.f32 1.442695, %v440_v18  ;;  %v800_v5 = vmul.f32 1.442695, %v762_v2  ;;  %v2868_v18 = vld [vmem:[%s2831_s12 + $0x40] sm:$0xff] }
  0x92   : > { %v449_v21 = vsel %vm433_vm0, %v2798_v19, 0.0  ;;  %v794_v28 = vmul.f32 1.442695, %v759_v17 }
  0x93   : > { %2514 = vpow2.f32 %v442_v20  ;;  %450 = vadd.xlane.f32.xlu1 %v449_v21  ;;  %v798_v20 = vmul.f32 1.442695, %v761_v9  ;;  %v732_v21 = vand.u32 2147483647, %v2868_v18 }
  0x94   : > { %2516 = vpow2.f32 %v804_v61 }
  0x95   : > { %2518 = vpow2.f32 %v802_v1  ;;  %v757_v33 = vsub.f32 0.0, %v732_v21 }
  0x96   : > { %2520 = vpow2.f32 %v800_v5 }
  0x97   : > { %2522 = vpow2.f32 %v798_v20  ;;  %v790_v40 = vmul.f32 1.442695, %v757_v33  ;;  %v836_v20 = vmax.f32 %v2848_v0, 0.0 }
  0x98   : > { %2524 = vpow2.f32 %v796_v23  ;;  %v2934_v23 = vld [vmem:[%s2831_s12 + $0xb0] sm:$0xff] }
  0x99   : > { %v2804_v26 = vpop.eup %2514 }
  0x9a   : > { %v446_v27 = vsel %vm433_vm0, %v2804_v26, 0.0  ;;  %v2865_v16 = vpop.eup %2516 }
  0x9b   : > { %447 = vadd.xlane.f32.xlu1 %v446_v27  ;;  %v2871_v22 = vpop.eup %2518  ;;  %v864_v25 = vadd.f32 1.0, %v2865_v16  ;;  %v2442_v27 = vunpack.c.h.bf16 %v2465_v8 }
  0x9c   : > { %v2874_v29 = vpop.eup %2520  ;;  %v863_v32 = vadd.f32 1.0, %v2871_v22 }
  0x9d   : > { %2526 = vrcp.f32 %v864_v25  ;;  %1080 = vxpose.xlu2.b32.end [16/16] %v2442_v27, 128  ;;  %v862_v38 = vadd.f32 1.0, %v2874_v29 }
  0x9e   : > { %2528 = vpow2.f32 %v794_v28 }
  0x9f   : > { %2530 = vrcp.f32 %v863_v32 }
  0xa0   : > { %2532 = vpow2.f32 %v792_v35 }
  0xa1   : > { %2534 = vlog2.f32 %v864_v25 }
  0xa2   : > { %2536 = vrcp.f32 %v862_v38 }
  0xa3   : > { %2538 = vpow2.f32 %v790_v40 }
  0xb4   : > { %1745 = vperm.xlu1 %2507, %v1724_v37   ;;  %v748_v37 = vand.u32 2147483647, %v2879_v34 }
  0xb6   : > { %v773_v39 = vsub.f32 0.0, %v748_v37  ;;  %v835_v37 = vmax.f32 %v2852_v4, 0.0 }
  0xb8   : > { %v822_v44 = vmul.f32 1.442695, %v773_v39 }
  0xba   : > { %2540 = vpow2.f32 %v822_v44 }
  0xbc   : > { %1750 = vperm.xlu1 %2507, %v1725_v42   ;;  %v2887_v42 = vpop.eup %2522 }
  0xbd   : > { %v2889_v43 = vpop.eup %2524  ;;  %v861_v51 = vadd.f32 1.0, %v2887_v42 }
  0xbe   : > { %v860_v63 = vadd.f32 1.0, %v2889_v43 }
  0xc4   : > { %1755 = vperm.xlu1 %2507, %v1726_v45   ;;  %v2891_v45 = vpop.eup %2526 }
  0xc5   : > { %v2893_v47 = vpop.eup %2528  ;;  %v2929_v17 = vmul.f32 %v2891_v45, %v2865_v16 }
  0xc6   : > { %v2900_v50 = vpop.eup %2530  ;;  %v859_v21 = vadd.f32 1.0, %v2893_v47 }
  0xcc   : > { %1760 = vperm.xlu1 %2507, %v1727_v52   ;;  %v2904_v52 = vpop.eup %2532 }
  0xcd   : > { %v2535_v57 = vpop.eup %2534 }
  0xce   : > { %v2909_v61 = vpop.eup %2536  ;;  %v905_v62 = vmul.f32 0.6931472, %v2535_v57 }
  0xcf   : > { %v2912_v1 = vpop.eup %2538 }
  0xd0   : > { %v2914_v2 = vpop.eup %2540  ;;  %v2916_v3 = vadd.f32 %v905_v62, %v839_v54 }
  0xd1   : > { %v2922_v11 = vadd.f32 1.0, %v2914_v2 }
  0xd2   : > { %4254 = vst [vmem:[#allocation6_spill] sm:$0xff] %v2916_v3 }
  0xd4   : > { %1765 = vperm.xlu1 %2507, %v1728_v60   ;;  %v730_v60 = vand.u32 2147483647, %v2898_v49 }
  0xd6   : > { %v755_v6 = vsub.f32 0.0, %v730_v60  ;;  %v848_v60 = vmax.f32 %v2879_v34, 0.0 }
  0xdc   : > { %1770 = vperm.xlu1 %2507, %v1729_v14   ;;  %v837_v14 = vmax.f32 %v2843_v59, 0.0 }
  0xe4   : > { %1775 = vperm.xlu1 %2507, %v1730_v31   ;;  %v1732_v31 = vld [vmem:[%s2818_s8 + $0x40] sm:$0xff] }
  0xeb   : > { %2508 = vset.pattern.permute.xlu0 %v4249_v30 }
  0xec   : > { %1780 = vperm.xlu1 %2507, %v1731_v56   ;;  %v746_v56 = vand.u32 2147483647, %v2934_v23 }
  0xf4   : > { %1785 = vperm.xlu1 %2507, %v1732_v31  }
 0x106   : > { %v2895_v48 = vpop.xlane.xlu1 %450 }
 0x107   : > { %2542 = vrcp.f32 %v2895_v48  ;;  %v476_v33 = vand.u32 2147483647, %v2895_v48  ;;  %v478_v16 = vand.u32 2147483648, %v2895_v48  ;;  %vm472_vm3 = vweird.f32 %v2895_v48 }
 0x108   : > { %2544 = vlog2.f32 %v863_v32 }
 0x109   : > { %2546 = vlog2.f32 %v862_v38  ;;  %vm477_vm5 = vcmp.eq.f32.partialorder %v476_v33, 8.507059e+37  ;;  %v858_v33 = vadd.f32 1.0, %v2904_v52 }
 0x10a   : > { %2548 = vlog2.f32 %v861_v51 }
 0x10b   : > { %2550 = vrcp.f32 %v861_v51 }
 0x10c   : > { %2552 = vlog2.f32 %v860_v63 }
 0x10d   : > { %v2543_v5 = vpop.eup %2542  ;;  %2554 = vpow2.f32 %v788_v58  ;;  %v479_v58 = vor.u32 1.1754944e-38, %v478_v16 }
 0x10e   : > { %v2545_v8 = vpop.eup %2544  ;;  %v468_v9 = vmul.f32 %v2543_v5, %v2895_v48  ;;  %v2919_v10 = vpop.xlane.xlu1 %447  ;;  %vm473_vm1 = vweird.f32 %v2543_v5 }
 0x10f   : > { %v2547_v15 = vpop.eup %2546  ;;  %2556 = vrcp.f32 %v2919_v10  ;;  %v903_v27 = vmul.f32 0.6931472, %v2545_v8  ;;  %vm474_vm4 = vmor %vm472_vm3, %vm473_vm1  ;;  %v786_v8 = vmul.f32 1.442695, %v755_v6  ;;  %v834_v6 = vmax.f32 %v2856_v7, 0.0 }
 0x110   : > { %v2549_v24 = vpop.eup %2548  ;;  %v469_v25 = vsub.f32 1.0, %v468_v9  ;;  %2558 = vlog2.f32 %v2922_v11  ;;  %v901_v28 = vmul.f32 0.6931472, %v2547_v15  ;;  %vm457_vm8 = vweird.f32 %v2919_v10 }
 0x111   : > { %v2938_v32 = vpop.eup %2550  ;;  %v899_v35 = vmul.f32 0.6931472, %v2549_v24  ;;  %v2943_v40 = vadd.f32 %v903_v27, %v838_v12  ;;  %2560 = vlog2.f32 %v859_v21  ;;  %vm983_vm1 = vcmp.ge.f32.partialorder %v2861_v13, 0.0 }
 0x112   : > { %v2553_v38 = vpop.eup %2552  ;;  %v470_v39 = vmul.f32 %v2543_v5, %v469_v25  ;;  %v2945_v41 = vadd.f32 %v901_v28, %v837_v14  ;;  %2562 = vrcp.f32 %v860_v63  ;;  %v1013_v63 = vmul.f32 %v2900_v50, %v2871_v22 }
 0x113   : > { %4255 = vst [vmem:[#allocation7_spill] sm:$0xff] %v2943_v40  ;;  %v2947_v44 = vpop.eup %2554  ;;  %v2950_v46 = vadd.f32 %v899_v35, %v836_v20  ;;  %v897_v51 = vmul.f32 0.6931472, %v2553_v38  ;;  %2564 = vrcp.f32 %v859_v21  ;;  %v771_v25 = vsub.f32 0.0, %v746_v56  ;;  %v2973_v35 = vld [vmem:[%s2831_s12 + $0xa8] sm:$0xff] }
 0x114   : > { %4256 = vst [vmem:[#allocation8_spill] sm:$0xff] %v2945_v41  ;;  %v471_v54 = vadd.f32 %v2543_v5, %v470_v39  ;;  %v461_v28 = vand.u32 2147483647, %v2919_v10  ;;  %v1012_v38 = vmul.f32 %v2909_v61, %v2874_v29  ;;  %2566 = vlog2.f32 %v858_v33  ;;  %v1733_v56 = vld [vmem:[%s2818_s8 + $0x48] sm:$0xff] }
 0x115   : > { %4257 = vst [vmem:[#allocation9_spill] sm:$0xff] %v2950_v46  ;;  %v2557_v57 = vpop.eup %2556  ;;  %v2955_v62 = vadd.f32 %v897_v51, %v835_v37  ;;  %v818_v21 = vmul.f32 1.442695, %v771_v25  ;;  %v2976_v37 = vld [vmem:[%s2831_s12 + $0x28] sm:$0xff]  ;;  %v745_v29 = vand.u32 2147483647, %v2973_v35  ;;  %1790 = vperm.xlu1 %2507, %v1733_v56  }
 0x116   : > { %v2559_v9 = vpop.eup %2558  ;;  %v453_v12 = vmul.f32 %v2557_v57, %v2919_v10  ;;  %v475_v14 = vsel %vm474_vm4, %v2543_v5, %v471_v54  ;;  %v463_v5 = vand.u32 2147483648, %v2919_v10  ;;  %vm458_vm7 = vweird.f32 %v2557_v57 }
 0x117   : > { %4258 = vst [vmem:[#allocation10_spill] sm:$0xff] %v2955_v62  ;;  %v480_v15 = vsel %vm477_vm5, %v479_v58, %v475_v14  ;;  %v923_v48 = vmul.f32 0.6931472, %v2559_v9  ;;  %v2561_v27 = vpop.eup %2560  ;;  %2568 = vpow2.f32 %v818_v21  ;;  %v857_v54 = vadd.f32 1.0, %v2912_v1  ;;  %vm459_vm10 = vmor %vm457_vm8, %vm458_vm7  ;;  %v495_v21 = vld [vmem:[%s3003_s15 + $0x68] sm:$0xff] }
 0x118   : > { %v454_v20 = vsub.f32 1.0, %v453_v12  ;;  %v481_v24 = vmul.f32 %v2798_v19, %v480_v15  ;;  %v2968_v16 = vpop.eup %2562  ;;  %v895_v19 = vmul.f32 0.6931472, %v2561_v27  ;;  %v464_v10 = vor.u32 1.1754944e-38, %v463_v5 }
 0x119   : > { %v2965_v31 = vadd.f32 %v923_v48, %v848_v60  ;;  %v2988_v58 = vpop.eup %2564  ;;  %v2995_v60 = vsel %vm989_vm2, %v2891_v45, %v2929_v17  ;;  %v729_v9 = vand.u32 2147483647, %v2976_v37  ;;  %vm462_vm11 = vcmp.eq.f32.partialorder %v461_v28, 8.507059e+37  ;;  %v3016_v48 = vld [vmem:[%s2831_s12 + $0xa0] sm:$0xff]  ;;  %v3036_v28 = vld [vmem:[%s2831_s12 + $0xb8] sm:$0xff] }
 0x11a   : > { %v455_v22 = vmul.f32 %v2557_v57, %v454_v20  ;;  %2355 = vmatpush.xpose.msk.msra.mxu0 %vm433_vm0, %v481_v24  ;;  %2470 = vmatpush.xpose.msk.msra.mxu1 %vm433_vm0, %v481_v24  ;;  %v2984_v51 = vadd.f32 %v895_v19, %v834_v6  ;;  %v3008_v14 = vsel %vm988_vm6, %v2900_v50, %v1013_v63  ;;  %2570 = vlog2.f32 %v857_v54  ;;  %v2567_v50 = vpop.eup %2566  ;;  %v485_v63 = vld [vmem:[%s3003_s15 + $0x18] sm:$0xff] }
 0x11b   : > { %4259 = vst [vmem:[#allocation11_spill] sm:$0xff] %v2965_v31  ;;  %2471 = vmatpush.xpose.msk.msra.mxu2 %vm433_vm0, %v481_v24  ;;  %2472 = vmatpush.xpose.msk.msra.mxu3 %vm433_vm0, %v481_v24  ;;  %v3013_v17 = vsel %vm987_vm9, %v2909_v61, %v1012_v38  ;;  %2572 = vrcp.f32 %v858_v33  ;;  %v770_v15 = vsub.f32 0.0, %v745_v29  ;;  %v856_v24 = vadd.f32 1.0, %v2947_v44 }
 0x11c   : > { %v456_v39 = vadd.f32 %v2557_v57, %v455_v22  ;;  %4260 = vst [vmem:[#allocation12_spill] sm:$0xff] %v2984_v51  ;;  %2574 = vpow2.f32 %v786_v8  ;;  %v1011_v61 = vmul.f32 %v2938_v32, %v2887_v42  ;;  %v482_v8 = vld [vmem:[%s3003_s15] sm:$0xff]  ;;  %v744_v27 = vand.u32 2147483647, %v3016_v48 }
 0x11d   : > { %2576 = vrcp.f32 %v857_v54  ;;  %v816_v6 = vmul.f32 1.442695, %v770_v15  ;;  %v3025_v25 = vpop.eup %2568  ;;  %v490_v42 = vld [vmem:[%s3003_s15 + $0x40] sm:$0xff]  ;;  %v832_v33 = vmax.f32 %v2868_v18, 0.0  ;;  %v754_v22 = vsub.f32 0.0, %v729_v9 }
 0x11e   : > { %v460_v12 = vsel %vm459_vm10, %v2557_v57, %v456_v39  ;;  %v833_v57 = vmax.f32 %v2861_v13, 0.0  ;;  %2578 = vlog2.f32 %v856_v24  ;;  %v3039_v5 = vadd.f32 1.0, %v3025_v25 }
 0x11f   : > { %v465_v45 = vsel %vm462_vm11, %v464_v10, %v460_v12  ;;  %2580 = vpow2.f32 %v816_v6  ;;  %v1010_v38 = vmul.f32 %v2968_v16, %v2889_v43  ;;  %v769_v54 = vsub.f32 0.0, %v744_v27  ;;  %v3055_v12 = vld [vmem:[%s2831_s12 + $0x20] sm:$0xff] }
 0x120   : > { %v466_v20 = vmul.f32 %v2804_v26, %v465_v45  ;;  %v893_v26 = vmul.f32 0.6931472, %v2567_v50  ;;  %v2571_v19 = vpop.eup %2570  ;;  %2582 = vrcp.f32 %v856_v24  ;;  %v1009_v10 = vmul.f32 %v2988_v58, %v2893_v47  ;;  %v487_v47 = vld [vmem:[%s3003_s15 + $0x28] sm:$0xff] }
 0x121   : > { %v2573_v56 = vpop.eup %2572  ;;  %2584 = vlog2.f32 %v3039_v5  ;;  %v891_v29 = vmul.f32 0.6931472, %v2571_v19  ;;  %v784_v9 = vmul.f32 1.442695, %v754_v22  ;;  %v3064_v43 = vsel %vm986_vm12, %v2938_v32, %v1011_v61  ;;  %v491_v22 = vld [vmem:[%s3003_s15 + $0x48] sm:$0xff] }
 0x122   : > { %2356 = vmatpush.xpose.msk.msra.mxu0 %vm433_vm0, %v466_v20  ;;  %2473 = vmatpush.xpose.msk.msra.mxu1 %vm433_vm0, %v466_v20  ;;  %v3047_v39 = vadd.f32 %v893_v26, %v833_v57  ;;  %v3057_v45 = vpop.eup %2574  ;;  %v814_v15 = vmul.f32 1.442695, %v769_v54  ;;  %v831_v24 = vmax.f32 %v2882_v36, 0.0  ;;  %v728_v61 = vand.u32 2147483647, %v3055_v12  ;;  %v496_v54 = vld [vmem:[%s3003_s15 + $0x70] sm:$0xff] }
 0x123   : > { %2474 = vmatpush.xpose.msk.msra.mxu2 %vm433_vm0, %v466_v20  ;;  %2475 = vmatpush.xpose.msk.msra.mxu3 %vm433_vm0, %v466_v20  ;;  %v3068_v20 = vpop.eup %2576  ;;  %v3072_v57 = vadd.f32 %v891_v29, %v832_v33  ;;  %v3076_v50 = vadd.f32 1.0, %v3057_v45  ;;  %2586 = vpow2.f32 %v784_v9  ;;  %v3091_v26 = vsel %vm984_vm14, %v2988_v58, %v1009_v10  ;;  %v492_v29 = vld [vmem:[%s3003_s15 + $0x50] sm:$0xff] }
 0x124   : > { %4261 = vst [vmem:[#allocation13_spill] sm:$0xff] %v3047_v39  ;;  %v2579_v32 = vpop.eup %2578  ;;  %2588 = vpow2.f32 %v814_v15  ;;  %v753_v33 = vsub.f32 0.0, %v728_v61  ;;  %vm982_vm2 = vcmp.ge.f32.partialorder %v2868_v18, 0.0  ;;  %v1007_v19 = vmul.f32 %v3068_v20, %v2912_v1  ;;  %v3132_v15 = vld [vmem:[%s2831_s12 + $0x8] sm:$0xff] }
 0x125   : > { %2360 = vmatmul.msk.f32.vlgmr.msra.gmra.mxu1 %vm433_vm0, %v485_v63  ;;  %2357 = vmatmul.msk.f32.vlgmr.msra.gmra.mxu0 %vm433_vm0, %v482_v8  ;;  %4262 = vst [vmem:[#allocation14_spill] sm:$0xff] %v3072_v57  ;;  %v3083_v63 = vsel %vm985_vm13, %v2968_v16, %v1010_v38  ;;  %v3086_v6 = vpop.eup %2580  ;;  %v846_v8 = vmax.f32 %v2934_v23, 0.0  ;;  %v889_v27 = vmul.f32 0.6931472, %v2579_v32  ;;  %2590 = vrcp.f32 %v3076_v50 }
 0x126   : > { %2365 = vmatmul.msk.f32.vlgmr.msra.gmra.mxu2 %vm433_vm0, %v490_v42  ;;  %2370 = vmatmul.msk.f32.vlgmr.msra.gmra.mxu3 %vm433_vm0, %v495_v21  ;;  %v2583_v16 = vpop.eup %2582  ;;  %v486_v42 = vld [vmem:[%s3003_s15 + $0x20] sm:$0xff]  ;;  %v3102_v58 = vadd.f32 1.0, %v3086_v6  ;;  %2592 = vrcp.f32 %v2922_v11  ;;  %v782_v1 = vmul.f32 1.442695, %v753_v33  ;;  %vm428_vm3 = vcmask 122880   ;;  %v3169_v33 = vld [vmem:[%s2831_s12 + $0x88] sm:$0xff] }
 0x127   : > { %1357 = vmatpush.msrb.mxu3 %v2995_v60  ;;  %1250 = vmatpush.msrb.mxu2 %v2879_v34  ;;  %v3114_v21 = vld [vmem:[%s2831_s12] sm:$0xff]  ;;  %v1006_v9 = vmul.f32 %v2583_v16, %v2947_v44  ;;  %v2731_v32 = vmov 0.0   ;;  %vm981_vm4 = vcmp.ge.f32.partialorder %v2882_v36, 0.0  ;;  %vm980_vm5 = vcmp.ge.f32.partialorder %v2898_v49, 0.0 }
 0x128   : > { %1178 = vmatpush.msrb.mxu1 %v2835_v53  ;;  %v1008_v53 = vmul.f32 %v2573_v56, %v2904_v52  ;;  %v2585_v52 = vpop.eup %2584  ;;  %2594 = vlog2.f32 %v3102_v58  ;;  %396 = vst.msk [vmem:[#allocation2] sm:$0xff] %vm395_vm15, %v2731_v32  ;;  %vm998_vm6 = vcmp.ge.f32.partialorder %v2879_v34, 0.0  ;;  %vm979_vm7 = vcmp.ge.f32.partialorder %v2976_v37, 0.0 }
 0x129   : > { %1358 = vmatpush.msrb.mxu3 %v3008_v14  ;;  %1251 = vmatpush.msrb.mxu2 %v3036_v28  ;;  %v919_v38 = vmul.f32 0.6931472, %v2585_v52  ;;  %v3120_v10 = vpop.eup %2586  ;;  %2596 = vpow2.f32 %v782_v1  ;;  %430 = vst.msk [vmem:[#allocation5] sm:$0x1] %vm428_vm3, %v2731_v32  ;;  %v3172_v52 = vld [vmem:[%s2831_s12 + $0x98] sm:$0xff]  ;;  %vm978_vm8 = vcmp.ge.f32.partialorder %v3055_v12, 0.0 }
 0x12a   : > { %1179 = vmatpush.msrb.mxu1 %v2839_v55  ;;  %v3110_v55 = vadd.f32 %v889_v27, %v831_v24  ;;  %v3125_v11 = vsel %vm983_vm1, %v2573_v56, %v1008_v53  ;;  %v3135_v24 = vld [vmem:[%s2831_s12 + $0x10] sm:$0xff]  ;;  %v3139_v56 = vpop.eup %2588  ;;  %v3147_v61 = vadd.f32 1.0, %v3120_v10  ;;  %v3152_v53 = vld [vmem:[%s2831_s12 + $0x18] sm:$0xff]  ;;  %397 = vst.msk [vmem:[#allocation2 + $0x8] sm:$0xff] %vm395_vm15, %v2731_v32  ;;  %v743_v34 = vand.u32 2147483647, %v3172_v52 }
 0x12b   : > { %1359 = vmatpush.msrb.mxu3 %v3013_v17  ;;  %1252 = vmatpush.msrb.mxu2 %v2934_v23  ;;  %v3143_v44 = vadd.f32 %v919_v38, %v846_v8  ;;  %v3155_v27 = vld [vmem:[%s2831_s12 + $0x90] sm:$0xff]  ;;  %v3166_v8 = vadd.f32 1.0, %v3139_v56  ;;  %v2591_v38 = vpop.eup %2590  ;;  %398 = vst.msk [vmem:[#allocation2 + $0x10] sm:$0xff] %vm395_vm15, %v2731_v32  ;;  %vm974_vm9 = vcmp.ge.f32.partialorder %v3114_v21, 0.0  ;;  %vm976_vm10 = vcmp.ge.f32.partialorder %v3135_v24, 0.0 }
 0x12c   : > { %4263 = vst [vmem:[#allocation15_spill] sm:$0xff] %v3110_v55  ;;  %1180 = vmatpush.msrb.mxu1 %v2843_v59  ;;  %v483_v59 = vld [vmem:[%s3003_s15 + $0x8] sm:$0xff]  ;;  %v1005_v1 = vmul.f32 %v2591_v38, %v3057_v45  ;;  %v741_v45 = vand.u32 2147483647, %v3169_v33  ;;  %v742_v31 = vand.u32 2147483647, %v3155_v27 }
 0x12d   : > { %1360 = vmatpush.msrb.mxu3 %v3064_v43  ;;  %1253 = vmatpush.msrb.mxu2 %v2973_v35  ;;  %4264 = vst [vmem:[#allocation16_spill] sm:$0xff] %v3143_v44  ;;  %2598 = vlog2.f32 %v3166_v8  ;;  %v768_v62 = vsub.f32 0.0, %v743_v34  ;;  %vm977_vm11 = vcmp.ge.f32.partialorder %v3152_v53, 0.0  ;;  %vm1129_vm12 = vcmask 588800  }
 0x12e   : > { %2361 = vmatmul.msk.f32.gmra.mxu1 %vm433_vm0, %v486_v42  ;;  %2366 = vmatmul.msk.f32.gmra.mxu2 %vm433_vm0, %v491_v22  ;;  %v3160_v42 = vsel %vm982_vm2, %v3068_v20, %v1007_v19  ;;  %v724_v22 = vand.u32 2147483647, %v3114_v21  ;;  %v726_v20 = vand.u32 2147483647, %v3135_v24  ;;  %v2593_v19 = vpop.eup %2592  ;;  %2600 = vrcp.f32 %v3147_v61  ;;  %399 = vst.msk [vmem:[#allocation2 + $0x18] sm:$0xff] %vm395_vm15, %v2731_v32 }
 0x12f   : > { %1361 = vmatpush.msrb.mxu3 %v3083_v63  ;;  %1254 = vmatpush.msrb.mxu2 %v3016_v48  ;;  %v2595_v30 = vpop.eup %2594  ;;  %400 = vst.msk [vmem:[#allocation2 + $0x20] sm:$0xff] %vm395_vm15, %v2731_v32  ;;  %vm996_vm13 = vcmp.ge.f32.partialorder %v2934_v23, 0.0  ;;  %vm997_vm14 = vcmp.ge.f32.partialorder %v3036_v28, 0.0  ;;  %vm995_vm1 = vcmp.ge.f32.partialorder %v2973_v35, 0.0  ;;  %vm994_vm2 = vcmp.ge.f32.partialorder %v3016_v48, 0.0 }
 0x130   : > { %2371 = vmatmul.msk.f32.gmra.mxu3 %vm433_vm0, %v496_v54  ;;  %1181 = vmatpush.msrb.mxu1 %v2848_v0  ;;  %v725_v0 = vand.u32 2147483647, %v3132_v15  ;;  %v3184_v54 = vsel %vm981_vm4, %v2583_v16, %v1006_v9  ;;  %v917_v16 = vmul.f32 0.6931472, %v2595_v30  ;;  %v3203_v9 = vsel %vm980_vm5, %v2591_v38, %v1005_v1  ;;  %401 = vst.msk [vmem:[#allocation2 + $0x28] sm:$0xff] %vm395_vm15, %v2731_v32 }
 0x131   : > { %1362 = vmatpush.msrb.mxu3 %v3091_v26  ;;  %2358 = vmatmul.msk.f32.gmra.mxu0 %vm433_vm0, %v483_v59  ;;  %v727_v59 = vand.u32 2147483647, %v3152_v53  ;;  %v749_v44 = vsub.f32 0.0, %v724_v22  ;;  %v751_v1 = vsub.f32 0.0, %v726_v20  ;;  %402 = vst.msk [vmem:[#allocation2 + $0x30] sm:$0xff] %vm395_vm15, %v2731_v32  ;;  %v1592_v23 = vsel %vm395_vm15, %v3184_v54, 0.0 }
 0x132   : > { %1182 = vmatpush.msrb.mxu1 %v2852_v4  ;;  %1255 = vmatpush.msrb.mxu2 %v3172_v52  ;;  %v1023_v4 = vmul.f32 %v2593_v19, %v2914_v2  ;;  %v3210_v2 = vpop.eup %2596  ;;  %v750_v38 = vsub.f32 0.0, %v725_v0  ;;  %v4267_v0 = vand.u32 2147483647, %v3036_v28  ;;  %403 = vst.msk [vmem:[#allocation2 + $0x38] sm:$0xff] %vm395_vm15, %v2731_v32  ;;  %vm993_vm4 = vcmp.ge.f32.partialorder %v3172_v52, 0.0 }
 0x133   : > { %1363 = vmatpush.msrb.mxu3 %v3125_v11  ;;  %v853_v3 = vadd.f32 1.0, %v3210_v2  ;;  %v778_v41 = vmul.f32 1.442695, %v751_v1  ;;  %404 = vst.msk [vmem:[#allocation2 + $0x40] sm:$0xff] %vm395_vm15, %v2731_v32  ;;  %v828_v1 = vmax.f32 %v3055_v12, 0.0  ;;  %vm992_vm5 = vcmp.ge.f32.partialorder %v3155_v27, 0.0 }
 0x134   : > { %1183 = vmatpush.msrb.mxu1 %v2856_v7  ;;  %1256 = vmatpush.msrb.mxu2 %v3155_v27  ;;  %v3215_v30 = vsel %vm998_vm6, %v2593_v19, %v1023_v4  ;;  %v4265_v7 = vmax.f32 %v2973_v35, 0.0  ;;  %v752_v19 = vsub.f32 0.0, %v727_v59  ;;  %v772_v20 = vsub.f32 0.0, %v4267_v0  ;;  %405 = vst.msk [vmem:[#allocation2 + $0x48] sm:$0xff] %vm395_vm15, %v2731_v32 }
 0x135   : > { %1364 = vmatpush.msrb.mxu3 %v3160_v42  ;;  %1429 = vmatpush.msrb.mxu0 %v3215_v30  ;;  %v844_v4 = vmax.f32 %v3016_v48, 0.0  ;;  %2602 = vlog2.f32 %v853_v3  ;;  %v767_v59 = vsub.f32 0.0, %v742_v31  ;;  %v776_v40 = vmul.f32 1.442695, %v750_v38  ;;  %v497_v31 = vld [vmem:[%s3003_s15 + $0x78] sm:$0xff]  ;;  %406 = vst.msk [vmem:[#allocation2 + $0x50] sm:$0xff] %vm395_vm15, %v2731_v32 }
 0x136   : > { %v3221_v22 = vadd.f32 %v917_v16, %v4265_v7  ;;  %2362 = vmatmul.msk.f32.gmra.mxu1 %vm433_vm0, %v487_v47  ;;  %2367 = vmatmul.msk.f32.gmra.mxu2 %vm433_vm0, %v492_v29  ;;  %v2599_v47 = vpop.eup %2598  ;;  %v3236_v16 = vld [vmem:[%s2831_s12 + $0x80] sm:$0xff]  ;;  %v766_v7 = vsub.f32 0.0, %v741_v45  ;;  %2604 = vrcp.f32 %v853_v3  ;;  %v780_v45 = vmul.f32 1.442695, %v752_v19  ;;  %v488_v3 = vld [vmem:[%s3003_s15 + $0x30] sm:$0xff]  ;;  %407 = vst.msk [vmem:[#allocation2 + $0x58] sm:$0xff] %vm395_vm15, %v2731_v32 }
 0x137   : > { %1365 = vmatpush.msrb.mxu3 %v3184_v54  ;;  %1184 = vmatpush.msrb.mxu1 %v2861_v13  ;;  %v2601_v29 = vpop.eup %2600  ;;  %v915_v0 = vmul.f32 0.6931472, %v2599_v47  ;;  %v820_v13 = vmul.f32 1.442695, %v772_v20  ;;  %v740_v38 = vand.u32 2147483647, %v3236_v16 }
 0x138   : > { %4266 = vst [vmem:[#allocation17_spill] sm:$0xff] %v3221_v22  ;;  %v774_v22 = vmul.f32 1.442695, %v749_v44  ;;  %1257 = vmatpush.msrb.mxu2 %v3169_v33  ;;  %v1004_v46 = vmul.f32 %v2601_v29, %v3120_v10  ;;  %2372 = vmatmul.msk.f32.gmra.mxu3 %vm433_vm0, %v497_v31  ;;  %v484_v19 = vld [vmem:[%s3003_s15 + $0x10] sm:$0xff]  ;;  %vm991_vm6 = vcmp.ge.f32.partialorder %v3169_v33, 0.0  ;;  %v1598_v48 = vsel %vm395_vm15, %v3091_v26, 0.0 }
 0x139   : > { %1366 = vmatpush.msrb.mxu3 %v3203_v9  ;;  %1185 = vmatpush.msrb.mxu1 %v2868_v18  ;;  %v3248_v44 = vadd.f32 %v915_v0, %v844_v4  ;;  %v808_v18 = vmul.f32 1.442695, %v766_v7  ;;  %408 = vst.msk [vmem:[#allocation2 + $0x60] sm:$0xff] %vm395_vm15, %v2731_v32  ;;  %v765_v7 = vsub.f32 0.0, %v740_v38 }
 0x13a   : > { %2606 = vpow2.f32 %v774_v22  ;;  %1258 = vmatpush.msrb.mxu2 %v3236_v16  ;;  %v3256_v10 = vsel %vm979_vm7, %v2601_v29, %v1004_v46  ;;  %v810_v22 = vmul.f32 1.442695, %v767_v59  ;;  %v1734_v46 = vld [vmem:[%s2818_s8 + $0x50] sm:$0xff]  ;;  %409 = vst.msk [vmem:[#allocation2 + $0x68] sm:$0xff] %vm395_vm15, %v2731_v32  ;;  %2359 = vmatmul.msk.f32.gmra.mxu0 %vm433_vm0, %v484_v19  ;;  %vm990_vm7 = vcmp.ge.f32.partialorder %v3236_v16, 0.0 }
 0x13b   : > { %4268 = vst [vmem:[#allocation18_spill] sm:$0xff] %v3248_v44  ;;  %2608 = vpow2.f32 %v776_v40  ;;  %v493_v40 = vld [vmem:[%s3003_s15 + $0x58] sm:$0xff]  ;;  %1186 = vmatpush.msrb.mxu1 %v2882_v36  ;;  %1367 = vmatpush.msrb.mxu3 %v3256_v10  ;;  %v2603_v34 = vpop.eup %2602  ;;  %v806_v38 = vmul.f32 1.442695, %v765_v7 }
 0x13c   : > { %2610 = vpow2.f32 %v778_v41  ;;  %v812_v41 = vmul.f32 1.442695, %v768_v62  ;;  %1795 = vperm.xlu1 %2507, %v1734_v46   ;;  %v2605_v36 = vpop.eup %2604  ;;  %v883_v20 = vmul.f32 0.6931472, %v2603_v34  ;;  %v3277_v62 = vpop.trf.xlu2  ;;  %410 = vst.msk [vmem:[#allocation2 + $0x70] sm:$0xff] %vm395_vm15, %v2731_v32  ;;  %v1736_v46 = vld [vmem:[%s2818_s8 + $0x60] sm:$0xff] }
 0x13d   : > { %2612 = vpow2.f32 %v780_v45  ;;  %v1003_v47 = vmul.f32 %v2605_v36, %v3210_v2  ;;  %1187 = vmatpush.msrb.mxu1 %v2898_v49  ;;  %411 = vst.msk [vmem:[#allocation2 + $0x78] sm:$0xff] %vm395_vm15, %v2731_v32 }
 0x13e   : > { %2363 = vmatmul.msk.f32.gmra.mxu1 %vm433_vm0, %v488_v3  ;;  %2614 = vpow2.f32 %v820_v13  ;;  %2368 = vmatmul.msk.f32.gmra.mxu2 %vm433_vm0, %v493_v40  ;;  %v3283_v29 = vadd.f32 %v883_v20, %v828_v1  ;;  %412 = vst.msk [vmem:[#allocation3] sm:$0xff] %vm395_vm15, %v2731_v32  ;;  %v489_v3 = vld [vmem:[%s3003_s15 + $0x38] sm:$0xff]  ;;  %v494_v40 = vld [vmem:[%s3003_s15 + $0x60] sm:$0xff] }
 0x13f   : > { %2616 = vpow2.f32 %v808_v18  ;;  %v3291_v2 = vsel %vm978_vm8, %v2605_v36, %v1003_v47  ;;  %1188 = vmatpush.msrb.mxu1 %v2976_v37  ;;  %413 = vst.msk [vmem:[#allocation3 + $0x8] sm:$0xff] %vm395_vm15, %v2731_v32 }
 0x140   : > { %v2607_v4 = vpop.eup %2606  ;;  %2618 = vpow2.f32 %v810_v22  ;;  %1368 = vmatpush.msrb.mxu3 %v3291_v2  ;;  %414 = vst.msk [vmem:[#allocation3 + $0x10] sm:$0xff] %vm395_vm15, %v2731_v32  ;;  %v3317_v22 = vpop.trf.xlu0 }
 0x141   : > { %v2609_v59 = vpop.eup %2608  ;;  %v3285_v0 = vadd.f32 1.0, %v2607_v4  ;;  %2620 = vpow2.f32 %v812_v41  ;;  %1189 = vmatpush.msrb.mxu1 %v3055_v12  ;;  %415 = vst.msk [vmem:[#allocation3 + $0x18] sm:$0xff] %vm395_vm15, %v2731_v32 }
 0x142   : > { %v2611_v45 = vpop.eup %2610  ;;  %v3293_v31 = vadd.f32 1.0, %v2609_v59  ;;  %416 = vst.msk [vmem:[#allocation3 + $0x20] sm:$0xff] %vm395_vm15, %v2731_v32 }
 0x143   : > { %v2613_v49 = vpop.eup %2612  ;;  %v3299_v13 = vadd.f32 1.0, %v2611_v45  ;;  %2622 = vrcp.f32 %v3285_v0  ;;  %417 = vst.msk [vmem:[#allocation3 + $0x28] sm:$0xff] %vm395_vm15, %v2731_v32  ;;  %1190 = vmatpush.msrb.mxu1 %v3152_v53 }
 0x144   : > { %v3305_v18 = vadd.f32 1.0, %v2613_v49  ;;  %2624 = vrcp.f32 %v3293_v31  ;;  %v3312_v1 = vpop.eup %2614  ;;  %1805 = vperm.xlu1 %2507, %v1736_v46   ;;  %v3332_v41 = vpop.trf.xlu2  ;;  %418 = vst.msk [vmem:[#allocation3 + $0x30] sm:$0xff] %vm395_vm15, %v2731_v32 }
 0x145   : > { %2626 = vrcp.f32 %v3299_v13  ;;  %v3320_v34 = vpop.eup %2616  ;;  %v3339_v20 = vadd.f32 1.0, %v3312_v1  ;;  %419 = vst.msk [vmem:[#allocation3 + $0x38] sm:$0xff] %vm395_vm15, %v2731_v32  ;;  %1191 = vmatpush.msrb.mxu1 %v3135_v24 }
 0x146   : > { %2628 = vrcp.f32 %v3305_v18  ;;  %2364 = vmatmul.msk.f32.gmra.mxu1 %vm433_vm0, %v489_v3  ;;  %v3326_v12 = vpop.eup %2618  ;;  %2369 = vmatmul.msk.f32.gmra.mxu2 %vm433_vm0, %v494_v40  ;;  %vm975_vm0 = vcmp.ge.f32.partialorder %v3132_v15, 0.0  ;;  %420 = vst.msk [vmem:[#allocation3 + $0x40] sm:$0xff] %vm395_vm15, %v2731_v32 }
 0x147   : > { %v3334_v19 = vpop.eup %2620  ;;  %2630 = vpow2.f32 %v806_v38  ;;  %4269 = vst [vmem:[#allocation19_spill] sm:$0xff] %v3339_v20  ;;  %1192 = vmatpush.msrb.mxu1 %v3132_v15 }
 0x148   : > { %2632 = vrcp.f32 %v3166_v8  ;;  %v3351_v38 = vadd.f32 1.0, %v3334_v19  ;;  %421 = vst.msk [vmem:[#allocation3 + $0x48] sm:$0xff] %vm395_vm15, %v2731_v32 }
 0x149   : > { %v2623_v36 = vpop.eup %2622  ;;  %2634 = vrcp.f32 %v3102_v58  ;;  %422 = vst.msk [vmem:[#allocation3 + $0x50] sm:$0xff] %vm395_vm15, %v2731_v32  ;;  %1193 = vmatpush.msrb.mxu1 %v3114_v21 }
 0x14a   : > { %v2625_v47 = vpop.eup %2624  ;;  %v999_v7 = vmul.f32 %v2623_v36, %v2607_v4  ;;  %4270 = vst [vmem:[#allocation20_spill] sm:$0xff] %v3351_v38  ;;  %v3359_v4 = vadd.f32 1.0, %v3326_v12  ;;  %2636 = vrcp.f32 %v3039_v5  ;;  %v3373_v5 = vpop.trf.xlu0 }
 0x14b   : > { %v2627_v3 = vpop.eup %2626  ;;  %v1000_v40 = vmul.f32 %v2625_v47, %v2609_v59  ;;  %2638 = vrcp.f32 %v3339_v20  ;;  %423 = vst.msk [vmem:[#allocation3 + $0x58] sm:$0xff] %vm395_vm15, %v2731_v32 }
 0x14c   : > { %v2629_v8 = vpop.eup %2628  ;;  %4271 = vst [vmem:[#allocation21_spill] sm:$0xff] %v3359_v4  ;;  %v1001_v46 = vmul.f32 %v2627_v3, %v2611_v45  ;;  %v1024_v44 = vsel %vm974_vm9, %v2623_v36, %v999_v7  ;;  %v1738_v45 = vld [vmem:[%s2818_s8 + $0x70] sm:$0xff]  ;;  %v3379_v7 = vadd.f32 1.0, %v3320_v34  ;;  %2640 = vrcp.f32 %v3351_v38 }
 0x14d   : > { %v1002_v58 = vmul.f32 %v2629_v8, %v2613_v49  ;;  %v1025_v59 = vsel %vm975_vm0, %v2625_v47, %v1000_v40  ;;  %v1579_v51 = vsel %vm395_vm15, %v1024_v44, 0.0  ;;  %v3376_v36 = vpop.eup %2630  ;;  %424 = vst.msk [vmem:[#allocation3 + $0x60] sm:$0xff] %vm395_vm15, %v2731_v32  ;;  %1815 = vperm.xlu1 %2507, %v1738_v45   ;;  %2642 = vrcp.f32 %v3359_v4 }
 0x14e   : > { %4272 = vst [vmem:[#allocation22_spill] sm:$0xff] %v3379_v7  ;;  %v1026_v49 = vsel %vm976_vm10, %v2627_v3, %v1001_v46  ;;  %v1580_v47 = vsel %vm395_vm15, %v1025_v59, 0.0  ;;  %1194 = vmatmul.f32.vlgmr.msrb.gmra.mxu1 %v3277_v62  ;;  %2373 = vmatmul.msk.f32.vlgmr.msrb.gmra.mxu2 %vm1129_vm12, %v3317_v22  ;;  %v3395_v3 = vpop.trf.xlu2  ;;  %v2633_v46 = vpop.eup %2632  ;;  %2644 = vrcp.f32 %v3379_v7  ;;  %v1588_v38 = vsel %vm395_vm15, %v3256_v10, 0.0  ;;  %v1739_v7 = vld [vmem:[%s2818_s8 + $0x78] sm:$0xff] }
 0x14f   : > { %v1027_v40 = vsel %vm977_vm11, %v2629_v8, %v1002_v58  ;;  %v1581_v20 = vadd.f32 %v1580_v47, %v1579_v51  ;;  %v1582_v39 = vsel %vm395_vm15, %v1026_v49, 0.0  ;;  %425 = vst.msk [vmem:[#allocation3 + $0x68] sm:$0xff] %vm395_vm15, %v2731_v32  ;;  %v2635_v45 = vpop.eup %2634  ;;  %v3401_v51 = vadd.f32 1.0, %v3376_v36 }
 0x150   : > { %v1584_v57 = vsel %vm395_vm15, %v1027_v40, 0.0  ;;  %426 = vst.msk [vmem:[#allocation3 + $0x70] sm:$0xff] %vm395_vm15, %v2731_v32  ;;  %1369 = vmatpush.msrb.mxu3 %v1027_v40  ;;  %v2637_v58 = vpop.eup %2636  ;;  %v1586_v47 = vsel %vm395_vm15, %v3291_v2, 0.0  ;;  %v1020_v2 = vmul.f32 %v2635_v45, %v3086_v6 }
 0x151   : > { %v1583_v8 = vadd.f32 %v1582_v39, %v1581_v20  ;;  %427 = vst.msk [vmem:[#allocation3 + $0x78] sm:$0xff] %vm395_vm15, %v2731_v32  ;;  %v2639_v40 = vpop.eup %2638  ;;  %v1021_v39 = vmul.f32 %v2637_v58, %v3025_v25  ;;  %2646 = vrcp.f32 %v3401_v51  ;;  %v1590_v25 = vsel %vm395_vm15, %v3203_v9, 0.0 }
 0x152   : > { %429 = vst.msk [vmem:[#allocation4] sm:$0x1] %vm428_vm3, %v2731_v32  ;;  %1370 = vmatpush.msrb.mxu3 %v1026_v49  ;;  %v1022_v4 = vmul.f32 %v2639_v40, %v3312_v1  ;;  %v2641_v55 = vpop.eup %2640  ;;  %v3420_v49 = vpop.trf.xlu0  ;;  %v3445_v9 = vsel %vm995_vm1, %v2635_v45, %v1020_v2  ;;  %2648 = vlog2.f32 %v3305_v18 }
 0x153   : > { %v1585_v20 = vadd.f32 %v1584_v57, %v1583_v8  ;;  %v1019_v57 = vmul.f32 %v2633_v46, %v3139_v56  ;;  %v3428_v6 = vsel %vm996_vm13, %v2637_v58, %v1021_v39  ;;  %v2643_v1 = vpop.eup %2642  ;;  %v1018_v28 = vmul.f32 %v2641_v55, %v3334_v19 }
 0x154   : > { %1371 = vmatpush.msrb.mxu3 %v1025_v59  ;;  %v3432_v10 = vsel %vm997_vm14, %v2639_v40, %v1022_v4  ;;  %v1017_v54 = vmul.f32 %v2643_v1, %v3326_v12  ;;  %2650 = vlog2.f32 %v3299_v13  ;;  %v1626_v13 = vsel %vm395_vm15, %v3215_v30, 0.0 }
 0x155   : > { %v1587_v32 = vadd.f32 %v1586_v47, %v1585_v20  ;;  %1430 = vmatpush.msrb.mxu0 %v3432_v10  ;;  %1820 = vperm.xlu1 %2507, %v1739_v7   ;;  %v1044_v35 = vsel %vm994_vm2, %v2633_v46, %v1019_v57  ;;  %v1596_v7 = vsel %vm395_vm15, %v3125_v11, 0.0  ;;  %v1043_v8 = vsel %vm993_vm4, %v2641_v55, %v1018_v28 }
 0x156   : > { %1372 = vmatpush.msrb.mxu3 %v1024_v44  ;;  %1197 = vmatmul.f32.gmra.mxu1 %v3332_v41  ;;  %v3438_v56 = vpop.trf.xlu2  ;;  %v2645_v44 = vpop.eup %2644  ;;  %v1042_v58 = vsel %vm992_vm5, %v2643_v1, %v1017_v54  ;;  %v4273_v20 = vmov 0   ;;  %v1608_v57 = vsel %vm395_vm15, %v2995_v60, 0.0  ;;  %2652 = vlog2.f32 %v3293_v31 }
 0x157   : > { %v1589_v59 = vadd.f32 %v1588_v38, %v1587_v32  ;;  %1373 = vmatmul.f32.vlgmr.msrb.gmra.mxu3 %v3277_v62  ;;  %2374 = vmatmul.msk.f32.gmra.mxu2 %vm1129_vm12, %v3373_v5  ;;  %v1594_v62 = vsel %vm395_vm15, %v3160_v42, 0.0  ;;  %v2647_v19 = vpop.eup %2646  ;;  %v1016_v45 = vmul.f32 %v2645_v44, %v3320_v34  ;;  %v1600_v34 = vsel %vm395_vm15, %v3083_v63, 0.0 }
 0x158   : > { %1431 = vmatpush.msrb.mxu0 %v3428_v6  ;;  %v1015_v46 = vmul.f32 %v2647_v19, %v3376_v36  ;;  %v1602_v36 = vsel %vm395_vm15, %v3064_v43, 0.0  ;;  %2509 = vset.pattern.permute.xlu2 %v4273_v20  ;;  %v1606_v32 = vsel %vm395_vm15, %v3008_v14, 0.0  ;;  %v1614_v28 = vsel %vm395_vm15, %v1042_v58, 0.0 }
 0x159   : > { %v1591_v38 = vadd.f32 %v1590_v25, %v1589_v59  ;;  %v1041_v47 = vsel %vm991_vm6, %v2645_v44, %v1016_v45  ;;  %v1616_v44 = vsel %vm395_vm15, %v1043_v8, 0.0  ;;  %2654 = vlog2.f32 %v3147_v61 }
 0x15a   : > { %1432 = vmatpush.msrb.mxu0 %v3445_v9  ;;  %v3462_v12 = vpop.trf.xlu0  ;;  %v1040_v40 = vsel %vm990_vm7, %v2647_v19, %v1015_v46  ;;  %v1612_v14 = vsel %vm395_vm15, %v1041_v47, 0.0  ;;  %v1620_v19 = vsel %vm395_vm15, %v3445_v9, 0.0  ;;  %v1624_v18 = vsel %vm395_vm15, %v3432_v10, 0.0 }
 0x15b   : > { %v1593_v4 = vadd.f32 %v1592_v23, %v1591_v38  ;;  %v1610_v1 = vsel %vm395_vm15, %v1040_v40, 0.0  ;;  %2656 = vlog2.f32 %v3285_v0  ;;  %v826_v45 = vmax.f32 %v3135_v24, 0.0 }
 0x15c   : > { %1433 = vmatpush.msrb.mxu0 %v1044_v35  ;;  %2658 = vlog2.f32 %v3076_v50  ;;  %v825_v61 = vmax.f32 %v3132_v15, 0.0  ;;  %v827_v0 = vmax.f32 %v3152_v53, 0.0  ;;  %v824_v30 = vmax.f32 %v3114_v21, 0.0 }
 0x15d   : > { %v1595_v42 = vadd.f32 %v1594_v62, %v1593_v4  ;;  %v1618_v62 = vsel %vm395_vm15, %v1044_v35, 0.0  ;;  %v829_v21 = vmax.f32 %v2976_v37, 0.0  ;;  %2660 = vlog2.f32 %v3401_v51 }
 0x15e   : > { %1200 = vmatmul.f32.gmra.mxu1 %v3395_v3  ;;  %1434 = vmatpush.msrb.mxu0 %v1043_v8  ;;  %v1085_v55 = vpop.trf.xlu2 }
 0x15f   : > { %v1597_v11 = vadd.f32 %v1596_v7, %v1595_v42  ;;  %1376 = vmatmul.f32.gmra.mxu3 %v3332_v41  ;;  %2375 = vmatmul.msk.f32.gmra.mxu2 %vm1129_vm12, %v3420_v49  ;;  %v1604_v41 = vsel %vm395_vm15, %v3013_v17, 0.0 }
 0x160   : > { %1435 = vmatpush.msrb.mxu0 %v1042_v58 }
 0x161   : > { %v1599_v26 = vadd.f32 %v1598_v48, %v1597_v11 }
 0x162   : > { %1436 = vmatpush.msrb.mxu0 %v1041_v47  ;;  %v3479_v63 = vpop.trf.xlu0 }
 0x163   : > { %v1601_v39 = vadd.f32 %v1600_v34, %v1599_v26 }
 0x164   : > { %1437 = vmatpush.msrb.mxu0 %v1040_v40 }
 0x165   : > { %v1603_v2 = vadd.f32 %v1602_v36, %v1601_v39  ;;  %2389 = vmatmul.msk.f32.vlgmr.msrb.gmra.mxu0 %vm1129_vm12, %v3317_v22 }
 0x166   : > { %1203 = vmatmul.f32.gmra.mxu1 %v3438_v56  ;;  %v1086_v25 = vpop.trf.xlu2 }
 0x167   : > { %v1605_v43 = vadd.f32 %v1604_v41, %v1603_v2  ;;  %1379 = vmatmul.f32.gmra.mxu3 %v3395_v3  ;;  %2376 = vmatmul.msk.f32.gmra.mxu2 %vm1129_vm12, %v3462_v12  ;;  %v2702_v41 = vld [vmem:[%s2831_s12 + $0x30] sm:$0xff] }
 0x168   : > { %v830_v2 = vmax.f32 %v2702_v41, 0.0 }
 0x169   : > { %v1607_v17 = vadd.f32 %v1606_v32, %v1605_v43 }
 0x16a   : > { %v3493_v22 = vpop.trf.xlu0 }
 0x16b   : > { %v1609_v59 = vadd.f32 %v1608_v57, %v1607_v17 }
 0x16d   : > { %v1611_v23 = vadd.f32 %v1610_v1, %v1609_v59  ;;  %2390 = vmatmul.msk.f32.gmra.mxu0 %vm1129_vm12, %v3373_v5 }
 0x16e   : > { %1206 = vmatmul.f32.gmra.mxu1 %v1085_v55  ;;  %v3499_v60 = vpop.trf.xlu2 }
 0x16f   : > { %v1613_v3 = vadd.f32 %v1612_v14, %v1611_v23  ;;  %1382 = vmatmul.f32.gmra.mxu3 %v3438_v56  ;;  %2377 = vmatmul.msk.f32.gmra.mxu2 %vm1129_vm12, %v3479_v63  ;;  %v1622_v56 = vsel %vm395_vm15, %v3428_v6, 0.0 }
 0x171   : > { %v1615_v38 = vadd.f32 %v1614_v28, %v1613_v3  ;;  %v1527_v3 = vsel %vm395_vm15, %v3283_v29, 0.0 }
 0x172   : > { %v3508_v5 = vpop.trf.xlu0 }
 0x173   : > { %v1617_v54 = vadd.f32 %v1616_v44, %v1615_v38  ;;  %v1578_v44 = vld [vmem:[#allocation5] sm:$0x1] }
 0x175   : > { %v1619_v4 = vadd.f32 %v1618_v62, %v1617_v54  ;;  %2391 = vmatmul.msk.f32.gmra.mxu0 %vm1129_vm12, %v3420_v49  ;;  %v2649_v49 = vpop.eup %2648 }
 0x176   : > { %1209 = vmatmul.f32.gmra.mxu1 %v1086_v25  ;;  %v3516_v35 = vpop.trf.xlu2  ;;  %v2651_v9 = vpop.eup %2650  ;;  %v881_v58 = vmul.f32 0.6931472, %v2649_v49 }
 0x177   : > { %v1621_v7 = vadd.f32 %v1620_v19, %v1619_v4  ;;  %1385 = vmatmul.f32.gmra.mxu3 %v1085_v55  ;;  %2378 = vmatmul.msk.f32.gmra.mxu2 %vm1129_vm12, %v3493_v22  ;;  %v2653_v8 = vpop.eup %2652  ;;  %v879_v42 = vmul.f32 0.6931472, %v2651_v9  ;;  %v4276_v9 = vld [vmem:[#allocation22_spill] sm:$0xff] }
 0x178   : > { %v2655_v46 = vpop.eup %2654  ;;  %v877_v11 = vmul.f32 0.6931472, %v2653_v8  ;;  %2662 = vlog2.f32 %v4276_v9  ;;  %v1735_v9 = vld [vmem:[%s2818_s8 + $0x58] sm:$0xff] }
 0x179   : > { %v1623_v6 = vadd.f32 %v1622_v56, %v1621_v7  ;;  %v2657_v50 = vpop.eup %2656  ;;  %v926_v55 = vadd.f32 %v879_v42, %v826_v45  ;;  %v885_v36 = vmul.f32 0.6931472, %v2655_v46  ;;  %v4277_v45 = vld [vmem:[#allocation13_spill] sm:$0xff]  ;;  %v4279_v42 = vld [vmem:[#allocation12_spill] sm:$0xff]  ;;  %1800 = vperm.xlu0 %2508, %v1735_v9  }
 0x17a   : > { %v3529_v48 = vpop.trf.xlu0  ;;  %v925_v34 = vadd.f32 %v877_v11, %v825_v61  ;;  %v875_v47 = vmul.f32 0.6931472, %v2657_v50  ;;  %v2659_v53 = vpop.eup %2658  ;;  %v1537_v61 = vsel %vm395_vm15, %v4277_v45, 0.0  ;;  %v1539_v51 = vsel %vm395_vm15, %v4279_v42, 0.0  ;;  %v4280_v46 = vld [vmem:[#allocation20_spill] sm:$0xff]  ;;  %v4281_v11 = vld [vmem:[#allocation10_spill] sm:$0xff] }
 0x17b   : > { %v1625_v31 = vadd.f32 %v1624_v18, %v1623_v6  ;;  %v887_v32 = vmul.f32 0.6931472, %v2659_v53  ;;  %v1523_v43 = vsel %vm395_vm15, %v926_v55, 0.0  ;;  %v929_v59 = vadd.f32 %v885_v36, %v829_v21  ;;  %v4274_v18 = vld [vmem:[#allocation15_spill] sm:$0xff]  ;;  %v4282_v55 = vld [vmem:[#allocation9_spill] sm:$0xff]  ;;  %v4283_v36 = vld [vmem:[#allocation8_spill] sm:$0xff] }
 0x17c   : > { %v1521_v40 = vsel %vm395_vm15, %v925_v34, 0.0  ;;  %v924_v39 = vadd.f32 %v875_v47, %v824_v30  ;;  %v1533_v29 = vsel %vm395_vm15, %v4274_v18, 0.0  ;;  %v1541_v30 = vsel %vm395_vm15, %v4281_v11, 0.0 }
 0x17d   : > { %v1627_v10 = vadd.f32 %v1626_v13, %v1625_v31  ;;  %2392 = vmatmul.msk.f32.gmra.mxu0 %vm1129_vm12, %v3462_v12  ;;  %v927_v12 = vadd.f32 %v881_v58, %v827_v0  ;;  %v930_v28 = vadd.f32 %v887_v32, %v830_v2  ;;  %v1529_v19 = vsel %vm395_vm15, %v929_v59, 0.0  ;;  %v4275_v13 = vld [vmem:[#allocation14_spill] sm:$0xff] }
 0x17e   : > { %1212 = vmatmul.f32.gmra.mxu1 %v3499_v60  ;;  %v3536_v24 = vpop.trf.xlu2  ;;  %v1535_v49 = vsel %vm395_vm15, %v4275_v13, 0.0  ;;  %v1543_v34 = vsel %vm395_vm15, %v4282_v55, 0.0  ;;  %v840_v47 = vmax.f32 %v3236_v16, 0.0  ;;  %v842_v2 = vmax.f32 %v3155_v27, 0.0 }
 0x17f   : > { %v1628_v15 = vrot.slane %v1627_v10, 4  ;;  %1388 = vmatmul.f32.gmra.mxu3 %v1086_v25  ;;  %2379 = vmatmul.msk.f32.gmra.mxu2 %vm1129_vm12, %v3508_v5  ;;  %v1520_v25 = vsel %vm395_vm15, %v924_v39, 0.0  ;;  %v1525_v37 = vsel %vm395_vm15, %v927_v12, 0.0  ;;  %v1531_v56 = vsel %vm395_vm15, %v930_v28, 0.0 }
 0x180   : > { %v1522_v17 = vadd.f32 %v1521_v40, %v1520_v25  ;;  %v1545_v12 = vsel %vm395_vm15, %v4283_v36, 0.0 }
 0x181   : > { %v1629_v26 = vadd.f32 %v1628_v15, %v1627_v10 }
 0x182   : > { %v3545_v1 = vpop.trf.xlu0  ;;  %v1524_v23 = vadd.f32 %v1523_v43, %v1522_v17  ;;  %v4285_v43 = vld [vmem:[#allocation19_spill] sm:$0xff]  ;;  %v4286_v17 = vld [vmem:[#allocation6_spill] sm:$0xff] }
 0x183   : > { %v1630_v20 = vrot.slane %v1629_v26, 2  ;;  %v1549_v59 = vsel %vm395_vm15, %v4286_v17, 0.0 }
 0x184   : > { %v1526_v62 = vadd.f32 %v1525_v37, %v1524_v23  ;;  %v843_v37 = vmax.f32 %v3172_v52, 0.0 }
 0x185   : > { %v1631_v57 = vadd.f32 %v1630_v20, %v1629_v26  ;;  %2393 = vmatmul.msk.f32.gmra.mxu0 %vm1129_vm12, %v3479_v63 }
 0x186   : > { %1215 = vmatmul.f32.gmra.mxu1 %v3516_v35  ;;  %v1090_v54 = vpop.trf.xlu2  ;;  %v1528_v4 = vadd.f32 %v1527_v3, %v1526_v62 }
 0x187   : > { %v1632_v14 = vrot.slane %v1631_v57, 1  ;;  %1391 = vmatmul.f32.gmra.mxu3 %v3499_v60  ;;  %2380 = vmatmul.msk.f32.gmra.mxu2 %vm1129_vm12, %v3529_v48 }
 0x188   : > { %v1530_v60 = vadd.f32 %v1529_v19, %v1528_v4 }
 0x189   : > { %v1633_v38 = vadd.f32 %v1632_v14, %v1631_v57 }
 0x18a   : > { %v3559_v7 = vpop.trf.xlu0  ;;  %v1532_v6 = vadd.f32 %v1531_v56, %v1530_v60 }
 0x18b   : > { %v1634_v63 = vadd.f32 %v1633_v38, %v1578_v44 }
 0x18c   : > { %v1534_v31 = vadd.f32 %v1533_v29, %v1532_v6 }
 0x18d   : > { %1635 = vst.msk [vmem:[#allocation5] sm:$0x1] %vm428_vm3, %v1634_v63  ;;  %2394 = vmatmul.msk.f32.gmra.mxu0 %vm1129_vm12, %v3493_v22  ;;  %v4278_v22 = vld [vmem:[#allocation21_spill] sm:$0xff] }
 0x18e   : > { %1218 = vmatmul.f32.gmra.mxu1 %v3536_v24  ;;  %2664 = vlog2.f32 %v4278_v22  ;;  %v1536_v8 = vadd.f32 %v1535_v49, %v1534_v31  ;;  %v1091_v10 = vpop.trf.xlu2  ;;  %v4287_v49 = vld [vmem:[#allocation18_spill] sm:$0xff] }
 0x18f   : > { %1394 = vmatmul.f32.gmra.mxu3 %v3516_v35  ;;  %2381 = vmatmul.msk.f32.gmra.mxu2 %vm1129_vm12, %v3545_v1  ;;  %v2661_v35 = vpop.eup %2660  ;;  %2666 = vlog2.f32 %v4280_v46  ;;  %v1559_v31 = vsel %vm395_vm15, %v4287_v49, 0.0 }
 0x190   : > { %v1538_v0 = vadd.f32 %v1537_v61, %v1536_v8  ;;  %v2663_v50 = vpop.eup %2662  ;;  %v907_v53 = vmul.f32 0.6931472, %v2661_v35  ;;  %2668 = vlog2.f32 %v4285_v43  ;;  %v4288_v8 = vld [vmem:[#allocation17_spill] sm:$0xff]  ;;  %v4289_v35 = vld [vmem:[#allocation16_spill] sm:$0xff] }
 0x191   : > { %v909_v40 = vmul.f32 0.6931472, %v2663_v50  ;;  %v1563_v46 = vsel %vm395_vm15, %v4289_v35, 0.0  ;;  %v4290_v50 = vld [vmem:[#allocation11_spill] sm:$0xff] }
 0x192   : > { %v3579_v58 = vpop.trf.xlu0  ;;  %v1540_v15 = vadd.f32 %v1539_v51, %v1538_v0  ;;  %v940_v32 = vadd.f32 %v907_v53, %v840_v47 }
 0x194   : > { %v2665_v21 = vpop.eup %2664  ;;  %v1542_v26 = vadd.f32 %v1541_v30, %v1540_v15  ;;  %v1551_v3 = vsel %vm395_vm15, %v940_v32, 0.0  ;;  %v1567_v15 = vsel %vm395_vm15, %v4290_v50, 0.0  ;;  %v1519_v32 = vld [vmem:[#allocation4] sm:$0x1] }
 0x195   : > { %2395 = vmatmul.msk.f32.gmra.mxu0 %vm1129_vm12, %v3508_v5  ;;  %v841_v5 = vmax.f32 %v3169_v33, 0.0  ;;  %v2667_v39 = vpop.eup %2666  ;;  %v911_v16 = vmul.f32 0.6931472, %v2665_v21 }
 0x196   : > { %1221 = vmatmul.f32.gmra.mxu1 %v1090_v54  ;;  %v1544_v20 = vadd.f32 %v1543_v34, %v1542_v26  ;;  %v1092_v57 = vpop.trf.xlu2  ;;  %v913_v33 = vmul.f32 0.6931472, %v2667_v39  ;;  %v2669_v62 = vpop.eup %2668 }
 0x197   : > { %1397 = vmatmul.f32.gmra.mxu3 %v3536_v24  ;;  %2382 = vmatmul.msk.f32.gmra.mxu2 %vm1129_vm12, %v3559_v7  ;;  %v4284_v24 = vld [vmem:[#allocation7_spill] sm:$0xff]  ;;  %v941_v14 = vadd.f32 %v909_v40, %v841_v5  ;;  %v942_v28 = vadd.f32 %v911_v16, %v842_v2  ;;  %v921_v60 = vmul.f32 0.6931472, %v2669_v62 }
 0x198   : > { %v1547_v41 = vsel %vm395_vm15, %v4284_v24, 0.0  ;;  %v1546_v25 = vadd.f32 %v1545_v12, %v1544_v20  ;;  %v943_v52 = vadd.f32 %v913_v33, %v843_v37  ;;  %v1746_v12 = vpop.permute.xlu1 %1745 }
 0x199   : > { %v1553_v38 = vsel %vm395_vm15, %v941_v14, 0.0  ;;  %v1555_v63 = vsel %vm395_vm15, %v942_v28, 0.0 }
 0x19a   : > { %v1548_v27 = vadd.f32 %v1547_v41, %v1546_v25  ;;  %v3603_v23 = vpop.trf.xlu0  ;;  %v1557_v18 = vsel %vm395_vm15, %v943_v52, 0.0 }
 0x19c   : > { %v1550_v44 = vadd.f32 %v1549_v59, %v1548_v27 }
 0x19d   : > { %2396 = vmatmul.msk.f32.gmra.mxu0 %vm1129_vm12, %v3529_v48 }
 0x19e   : > { %1224 = vmatmul.f32.gmra.mxu1 %v1091_v10  ;;  %v1552_v19 = vadd.f32 %v1551_v3, %v1550_v44  ;;  %v1093_v6 = vpop.trf.xlu2  ;;  %v3656_v3 = vld [vmem:[#allocation5] ss:$0 sm:$0xff] }
 0x19f   : > { %1400 = vmatmul.f32.gmra.mxu3 %v1090_v54  ;;  %2383 = vmatmul.msk.f32.gmra.mxu2 %vm1129_vm12, %v3579_v58  ;;  %v2703_v54 = vld [vmem:[%s2831_s12 + $0xb8] sm:$0xff] }
 0x1a0   : > { %v1554_v4 = vadd.f32 %v1553_v38, %v1552_v19  ;;  %v847_v56 = vmax.f32 %v2703_v54, 0.0 }
 0x1a2   : > { %v578_v48 = vpop.f32.mrf.mxu1  ;;  %v1556_v29 = vadd.f32 %v1555_v63, %v1554_v4  ;;  %v1125_v61 = vpop.trf.xlu0  ;;  %v947_v22 = vadd.f32 %v921_v60, %v847_v56  ;;  %v1823_v4 = vadd.f32 %v3656_v3, %v1746_v12  ;;  %v1737_v56 = vld [vmem:[%s2818_s8 + $0x68] sm:$0xff] }
 0x1a3   : > { %v620_v13 = vsub.f32 0.0, %v578_v48  ;;  %v569_v43 = vpop.f32.mrf.mxu0  ;;  %1810 = vperm.xlu2 %2509, %v1737_v56  }
 0x1a4   : > { %v1558_v45 = vadd.f32 %v1557_v18, %v1556_v29  ;;  %v1565_v11 = vsel %vm395_vm15, %v947_v22, 0.0  ;;  %v617_v27 = vsub.f32 0.0, %v569_v43  ;;  %v3667_v60 = vadd.f32 1.0, %v1823_v4 }
 0x1a5   : > { %2397 = vmatmul.msk.f32.gmra.mxu0 %vm1129_vm12, %v3545_v1  ;;  %636 = vst.msk [vmem:[%s3614_s18 + $0x18] sm:$0xff] %vm395_vm15, %v620_v13  ;;  %v1561_v1 = vsel %vm395_vm15, %v4288_v8, 0.0 }
 0x1a6   : > { %1227 = vmatmul.f32.gmra.mxu1 %v1092_v57  ;;  %v1094_v34 = vpop.trf.xlu2  ;;  %633 = vst.msk [vmem:[%s3614_s18] sm:$0xff] %vm395_vm15, %v617_v27  ;;  %2670 = vrcp.f32 %v3667_v60 }
 0x1a7   : > { %1403 = vmatmul.f32.gmra.mxu3 %v1091_v10  ;;  %2384 = vmatmul.msk.f32.gmra.mxu2 %vm1129_vm12, %v3603_v23  ;;  %v1560_v10 = vadd.f32 %v1559_v31, %v1558_v45 }
 0x1a9   : > { %v593_v42 = vpop.f32.mrf.mxu2  ;;  %v1562_v0 = vadd.f32 %v1561_v1, %v1560_v10  ;;  %v608_v41 = vpop.f32.mrf.mxu3 }
 0x1aa   : > { %v1126_v21 = vpop.trf.xlu0  ;;  %v625_v37 = vsub.f32 0.0, %v593_v42  ;;  %v630_v38 = vsub.f32 0.0, %v608_v41  ;;  %v1051_v41 = vld [vmem:[#allocation2 + $0x10] sm:$0xff] }
 0x1ab   : > { %v581_v51 = vpop.f32.mrf.mxu1  ;;  %v1564_v30 = vadd.f32 %v1563_v46, %v1562_v0 }
 0x1ac   : > { %v621_v33 = vsub.f32 0.0, %v581_v51  ;;  %641 = vst.msk [vmem:[%s3614_s18 + $0x40] sm:$0xff] %vm395_vm15, %v625_v37  ;;  %v3690_v46 = vpop.eup %2670 }
 0x1ad   : > { %2398 = vmatmul.msk.f32.gmra.mxu0 %vm1129_vm12, %v3559_v7  ;;  %v1566_v55 = vadd.f32 %v1565_v11, %v1564_v30  ;;  %646 = vst.msk [vmem:[%s3614_s18 + $0x68] sm:$0xff] %vm395_vm15, %v630_v38  ;;  %vm1877_vm8 = vweird.f32 %v3690_v46 }
 0x1ae   : > { %1230 = vmatmul.f32.gmra.mxu1 %v1093_v6  ;;  %v1095_v20 = vpop.trf.xlu2  ;;  %637 = vst.msk [vmem:[%s3614_s18 + $0x20] sm:$0xff] %vm395_vm15, %v621_v33  ;;  %v572_v44 = vpop.f32.mrf.mxu0 }
 0x1af   : > { %1406 = vmatmul.f32.gmra.mxu3 %v1092_v57  ;;  %2385 = vmatmul.msk.f32.gmra.mxu2 %vm1129_vm12, %v1125_v61  ;;  %v1568_v53 = vadd.f32 %v1567_v15, %v1566_v55  ;;  %v1751_v57 = vpop.permute.xlu1 %1750  ;;  %v618_v18 = vsub.f32 0.0, %v572_v44  ;;  %v1872_v15 = vmul.f32 %v3690_v46, %v3667_v60  ;;  %v1342_v44 = vld [vmem:[#allocation3 + $0x8] sm:$0xff] }
 0x1b0   : > { %v1824_v45 = vadd.f32 %v3656_v3, %v1751_v57 }
 0x1b1   : > { %v596_v47 = vpop.f32.mrf.mxu2  ;;  %v1569_v36 = vrot.slane %v1568_v53, 4  ;;  %634 = vst.msk [vmem:[%s3614_s18 + $0x8] sm:$0xff] %vm395_vm15, %v618_v18 }
 0x1b2   : > { %v1127_v16 = vpop.trf.xlu0  ;;  %v626_v62 = vsub.f32 0.0, %v596_v47  ;;  %v3684_v42 = vadd.f32 1.0, %v1824_v45  ;;  %v1050_v47 = vld [vmem:[#allocation2 + $0x8] sm:$0xff] }
 0x1b3   : > { %v584_v26 = vpop.f32.mrf.mxu1  ;;  %v1570_v7 = vadd.f32 %v1569_v36, %v1568_v53  ;;  %v1873_v36 = vsub.f32 1.0, %v1872_v15 }
 0x1b4   : > { %v622_v63 = vsub.f32 0.0, %v584_v26  ;;  %642 = vst.msk [vmem:[%s3614_s18 + $0x48] sm:$0xff] %vm395_vm15, %v626_v62  ;;  %2672 = vrcp.f32 %v3684_v42  ;;  %vm1891_vm10 = vweird.f32 %v3684_v42 }
 0x1b5   : > { %2399 = vmatmul.msk.f32.gmra.mxu0 %vm1129_vm12, %v3579_v58  ;;  %v1571_v5 = vrot.slane %v1570_v7, 2 }
 0x1b6   : > { %1233 = vmatmul.f32.gmra.mxu1 %v1094_v34  ;;  %v1096_v14 = vpop.trf.xlu2  ;;  %638 = vst.msk [vmem:[%s3614_s18 + $0x28] sm:$0xff] %vm395_vm15, %v622_v63  ;;  %v1052_v63 = vld [vmem:[#allocation2 + $0x18] sm:$0xff] }
 0x1b7   : > { %1409 = vmatmul.f32.gmra.mxu3 %v1093_v6  ;;  %2386 = vmatmul.msk.f32.gmra.mxu2 %vm1129_vm12, %v1126_v21  ;;  %v1572_v39 = vadd.f32 %v1571_v5, %v1570_v7  ;;  %v1756_v48 = vpop.permute.xlu1 %1755  ;;  %v575_v9 = vpop.f32.mrf.mxu0 }
 0x1b8   : > { %v1825_v55 = vadd.f32 %v3656_v3, %v1756_v48 }
 0x1b9   : > { %v3640_v40 = vpop.f32.mrf.mxu2  ;;  %v1573_v2 = vrot.slane %v1572_v39, 1 }
 0x1ba   : > { %v1128_v28 = vpop.trf.xlu0  ;;  %v627_v6 = vsub.f32 0.0, %v3640_v40  ;;  %v3701_v7 = vadd.f32 1.0, %v1825_v55  ;;  %v3703_v5 = vpop.eup %2672  ;;  %v1341_v40 = vld [vmem:[#allocation3] sm:$0xff] }
 0x1bb   : > { %v3642_v24 = vpop.f32.mrf.mxu1  ;;  %v1574_v58 = vadd.f32 %v1573_v2, %v1572_v39  ;;  %v1887_v43 = vmul.f32 %v3703_v5, %v3684_v42  ;;  %vm1892_vm11 = vweird.f32 %v3703_v5  ;;  %v1053_v55 = vld [vmem:[#allocation2 + $0x20] sm:$0xff] }
 0x1bc   : > { %v623_v49 = vsub.f32 0.0, %v3642_v24  ;;  %643 = vst.msk [vmem:[%s3614_s18 + $0x50] sm:$0xff] %vm395_vm15, %v627_v6  ;;  %2674 = vrcp.f32 %v3701_v7  ;;  %vm1906_vm14 = vweird.f32 %v3701_v7 }
 0x1bd   : > { %2400 = vmatmul.msk.f32.gmra.mxu0 %vm1129_vm12, %v3603_v23  ;;  %v1575_v25 = vadd.f32 %v1574_v58, %v1519_v32  ;;  %v611_v23 = vpop.f32.mrf.mxu3  ;;  %v1874_v58 = vmul.f32 %v3690_v46, %v1873_v36  ;;  %v1888_v33 = vsub.f32 1.0, %v1887_v43 }
 0x1be   : > { %1236 = vmatmul.f32.gmra.mxu1 %v1095_v20  ;;  %v631_v29 = vsub.f32 0.0, %v611_v23  ;;  %639 = vst.msk [vmem:[%s3614_s18 + $0x30] sm:$0xff] %vm395_vm15, %v623_v49 }
 0x1bf   : > { %1412 = vmatmul.f32.gmra.mxu3 %v1094_v34  ;;  %2387 = vmatmul.msk.f32.gmra.mxu2 %vm1129_vm12, %v1127_v16  ;;  %1577 = vst.msk [vmem:[#allocation4] sm:$0x1] %vm428_vm3, %v1575_v25  ;;  %v1761_v8 = vpop.permute.xlu1 %1760  ;;  %v1049_v34 = vld [vmem:[#allocation2] sm:$0xff]  ;;  %vm1876_vm3 = vweird.f32 %v3667_v60  ;;  %v1875_v37 = vadd.f32 %v3690_v46, %v1874_v58 }
 0x1c0   : > { %647 = vst.msk [vmem:[%s3614_s18 + $0x70] sm:$0xff] %vm395_vm15, %v631_v29  ;;  %vm3721_vm9 = vmor %vm1876_vm3, %vm1877_vm8 }
 0x1c1   : > { %v602_v17 = vpop.f32.mrf.mxu2  ;;  %v1879_v6 = vsel %vm3721_vm9, %v3690_v46, %v1875_v37 }
 0x1c2   : > { %v628_v1 = vsub.f32 0.0, %v602_v17  ;;  %v1880_v17 = vand.u32 2147483647, %v3667_v60  ;;  %v3725_v62 = vpop.eup %2674 }
 0x1c3   : > { %v590_v59 = vpop.f32.mrf.mxu1  ;;  %vm1907_vm1 = vweird.f32 %v3725_v62 }
 0x1c4   : > { %v624_v10 = vsub.f32 0.0, %v590_v59  ;;  %644 = vst.msk [vmem:[%s3614_s18 + $0x58] sm:$0xff] %vm395_vm15, %v628_v1  ;;  %v1882_v59 = vand.u32 2147483648, %v3667_v60  ;;  %vm3729_vm0 = vcmp.eq.f32.partialorder %v1880_v17, 8.507059e+37  ;;  %v1895_v1 = vand.u32 2147483647, %v3684_v42  ;;  %vm3792_vm2 = vmor %vm1906_vm14, %vm1907_vm1 }
 0x1c5   : > { %2401 = vmatmul.msk.f32.gmra.mxu0 %vm1129_vm12, %v1125_v61  ;;  %v614_v54 = vpop.f32.mrf.mxu3  ;;  %v619_v61 = vsub.f32 0.0, %v575_v9 }
 0x1c6   : > { %1239 = vmatmul.f32.gmra.mxu1 %v1096_v14  ;;  %v632_v22 = vsub.f32 0.0, %v614_v54  ;;  %640 = vst.msk [vmem:[%s3614_s18 + $0x38] sm:$0xff] %vm395_vm15, %v624_v10  ;;  %v1883_v56 = vor.u32 1.1754944e-38, %v1882_v59  ;;  %v1897_v10 = vand.u32 2147483648, %v3684_v42  ;;  %vm3759_vm13 = vcmp.eq.f32.partialorder %v1895_v1, 8.507059e+37 }
 0x1c7   : > { %1415 = vmatmul.f32.gmra.mxu3 %v1095_v20  ;;  %2388 = vmatmul.msk.f32.gmra.mxu2 %vm1129_vm12, %v1128_v28  ;;  %635 = vst.msk [vmem:[%s3614_s18 + $0x10] sm:$0xff] %vm395_vm15, %v619_v61  ;;  %v1766_v53 = vpop.permute.xlu1 %1765 }
 0x1c8   : > { %648 = vst.msk [vmem:[%s3614_s18 + $0x78] sm:$0xff] %vm395_vm15, %v632_v22  ;;  %v1827_v60 = vadd.f32 %v3656_v3, %v1766_v53 }
 0x1c9   : > { %v605_v52 = vpop.f32.mrf.mxu2 }
 0x1ca   : > { %v629_v51 = vsub.f32 0.0, %v605_v52 }
 0x1cb   : > { %v1195_v19 = vpop.f32.mrf.mxu1 }
 0x1cc   : > { %645 = vst.msk [vmem:[%s3614_s18 + $0x60] sm:$0xff] %vm395_vm15, %v629_v51  ;;  %v3749_v51 = vadd.f32 1.0, %v1827_v60 }
 0x1cd   : > { %2402 = vmatmul.msk.f32.gmra.mxu0 %vm1129_vm12, %v1126_v21 }
 0x1ce   : > { %vm1936_vm8 = vweird.f32 %v3749_v51 }
 0x1cf   : > { %1418 = vmatmul.f32.gmra.mxu3 %v1096_v14  ;;  %v1771_v27 = vpop.permute.xlu1 %1770 }
 0x1d1   : > { %v1260_v13 = vpop.f32.mrf.mxu2 }
 0x1d2   : > { %v1261_v30 = vadd.f32 %v1260_v13, %v1195_v19  ;;  %v3727_v19 = vld [vmem:[#allocation4] ss:$0 sm:$0xff]  ;;  %v1889_v13 = vmul.f32 %v3703_v5, %v1888_v33 }
 0x1d3   : > { %v1198_v31 = vpop.f32.mrf.mxu1 }
 0x1d4   : > { %v1308_v21 = vadd.f32 %v1261_v30, %v1049_v34 }
 0x1d5   : > { %2403 = vmatmul.msk.f32.gmra.mxu0 %vm1129_vm12, %v1127_v16  ;;  %v1826_v16 = vadd.f32 %v3656_v3, %v1761_v8  ;;  %v1884_v8 = vsel %vm3729_vm0, %v1883_v56, %v1879_v6  ;;  %v1054_v56 = vld [vmem:[#allocation2 + $0x28] sm:$0xff] }
 0x1d6   : > { %1325 = vst.msk [vmem:[#allocation2] sm:$0xff] %vm395_vm15, %v1308_v21 }
 0x1d7   : > { %v3719_v14 = vadd.f32 1.0, %v1826_v16  ;;  %v1776_v42 = vpop.permute.xlu1 %1775 }
 0x1d9   : > { %2676 = vrcp.f32 %v3719_v14  ;;  %vm1921_vm5 = vweird.f32 %v3719_v14 }
 0x1da   : > { %v1374_v35 = vpop.f32.mrf.mxu3  ;;  %v1263_v0 = vpop.f32.mrf.mxu2  ;;  %2678 = vrcp.f32 %v3749_v51 }
 0x1db   : > { %v1201_v11 = vpop.f32.mrf.mxu1  ;;  %v1264_v50 = vadd.f32 %v1263_v0, %v1198_v31  ;;  %v1902_v31 = vmul.f32 %v3725_v62, %v3701_v7 }
 0x1dd   : > { %2404 = vmatmul.msk.f32.gmra.mxu0 %vm1129_vm12, %v1128_v28  ;;  %v1309_v26 = vadd.f32 %v1264_v50, %v1050_v47  ;;  %v1640_v18 = vld [vmem:[#allocation2] sm:$0xff]  ;;  %vm3753_vm12 = vmor %vm1891_vm10, %vm1892_vm11  ;;  %v1903_v30 = vsub.f32 1.0, %v1902_v31  ;;  %v1343_v50 = vld [vmem:[#allocation3 + $0x10] sm:$0xff] }
 0x1de   : > { %v1659_v22 = vsub.f32 %v3727_v19, %v1640_v18 }
 0x1df   : > { %1326 = vst.msk [vmem:[#allocation2 + $0x8] sm:$0xff] %vm395_vm15, %v1309_v26  ;;  %v3757_v47 = vpop.eup %2676  ;;  %v1904_v58 = vmul.f32 %v3725_v62, %v1903_v30 }
 0x1e0   : > { %v1675_v21 = vmul.f32 0.005, %v1659_v22  ;;  %v1917_v43 = vmul.f32 %v3757_v47, %v3719_v14  ;;  %vm1922_vm6 = vweird.f32 %v3757_v47 }
 0x1e1   : > { %vm3829_vm7 = vmor %vm1921_vm5, %vm1922_vm6 }
 0x1e2   : > { %v1377_v12 = vpop.f32.mrf.mxu3  ;;  %v1439_v39 = vpop.f32.mrf.mxu0 }
 0x1e3   : > { %v1266_v20 = vpop.f32.mrf.mxu2  ;;  %v1440_v24 = vadd.f32 %v1439_v39, %v1374_v35  ;;  %v1204_v2 = vpop.f32.mrf.mxu1  ;;  %v1890_v35 = vadd.f32 %v3703_v5, %v1889_v13  ;;  %v1898_v39 = vor.u32 1.1754944e-38, %v1897_v10 }
 0x1e4   : > { %v1267_v32 = vadd.f32 %v1266_v20, %v1201_v11  ;;  %v1828_v20 = vadd.f32 %v3656_v3, %v1771_v27 }
 0x1e5   : > { %v1487_v25 = vadd.f32 %v1440_v24, %v1341_v40 }
 0x1e6   : > { %v1310_v57 = vadd.f32 %v1267_v32, %v1051_v41  ;;  %v1641_v24 = vld [vmem:[#allocation2 + $0x8] sm:$0xff]  ;;  %v1894_v41 = vsel %vm3753_vm12, %v3703_v5, %v1890_v35  ;;  %v3775_v33 = vadd.f32 1.0, %v1828_v20  ;;  %v2127_v5 = vld [vmem:[%s3614_s18] sm:$0xff] }
 0x1e7   : > { %1503 = vst.msk [vmem:[#allocation3] sm:$0xff] %vm395_vm15, %v1487_v25  ;;  %v1660_v59 = vsub.f32 %v3727_v19, %v1641_v24  ;;  %v1899_v37 = vsel %vm3759_vm13, %v1898_v39, %v1894_v41  ;;  %v1345_v39 = vld [vmem:[#allocation3 + $0x20] sm:$0xff]  ;;  %v1055_v24 = vld [vmem:[#allocation2 + $0x30] sm:$0xff] }
 0x1e8   : > { %1327 = vst.msk [vmem:[#allocation2 + $0x10] sm:$0xff] %vm395_vm15, %v1310_v57  ;;  %2680 = vrcp.f32 %v3775_v33  ;;  %vm1951_vm11 = vweird.f32 %v3775_v33 }
 0x1ea   : > { %v1380_v23 = vpop.f32.mrf.mxu3  ;;  %v1442_v52 = vpop.f32.mrf.mxu0 }
 0x1eb   : > { %v1269_v38 = vpop.f32.mrf.mxu2  ;;  %v1443_v48 = vadd.f32 %v1442_v52, %v1377_v12  ;;  %v1207_v4 = vpop.f32.mrf.mxu1  ;;  %v1905_v52 = vadd.f32 %v3725_v62, %v1904_v58 }
 0x1ec   : > { %v1270_v29 = vadd.f32 %v1269_v38, %v1204_v2  ;;  %v1910_v38 = vand.u32 2147483647, %v3701_v7 }
 0x1ed   : > { %v1488_v49 = vadd.f32 %v1443_v48, %v1342_v44  ;;  %v3781_v44 = vpop.eup %2678  ;;  %v1912_v48 = vand.u32 2147483648, %v3701_v7  ;;  %v1909_v11 = vsel %vm3792_vm2, %v3725_v62, %v1905_v52 }
 0x1ee   : > { %v1691_v9 = vld [vmem:[#allocation3] sm:$0xff]  ;;  %v1311_v45 = vadd.f32 %v1270_v29, %v1052_v63  ;;  %v1918_v63 = vsub.f32 1.0, %v1917_v43  ;;  %v1676_v29 = vmul.f32 0.005, %v1660_v59  ;;  %vm3798_vm4 = vcmp.eq.f32.partialorder %v1910_v38, 8.507059e+37 }
 0x1ef   : > { %v1707_v61 = vmul.f32 2.0, %v1691_v9  ;;  %1504 = vst.msk [vmem:[#allocation3 + $0x8] sm:$0xff] %vm395_vm15, %v1488_v49  ;;  %v1829_v9 = vadd.f32 %v3656_v3, %v1776_v42  ;;  %v1913_v35 = vor.u32 1.1754944e-38, %v1912_v48  ;;  %v1925_v42 = vand.u32 2147483647, %v3719_v14 }
 0x1f0   : > { %1328 = vst.msk [vmem:[#allocation2 + $0x18] sm:$0xff] %vm395_vm15, %v1311_v45  ;;  %v1642_v45 = vld [vmem:[#allocation2 + $0x10] sm:$0xff]  ;;  %v1919_v7 = vmul.f32 %v3757_v47, %v1918_v63  ;;  %vm1937_vm9 = vweird.f32 %v3781_v44 }
 0x1f1   : > { %v1839_v46 = vadd.f32 1.0, %v1707_v61  ;;  %v1781_v61 = vpop.permute.xlu1 %1780  ;;  %vm3835_vm3 = vcmp.eq.f32.partialorder %v1925_v42, 8.507059e+37  ;;  %vm3866_vm0 = vmor %vm1936_vm8, %vm1937_vm9 }
 0x1f2   : > { %v1383_v0 = vpop.f32.mrf.mxu3  ;;  %v1445_v15 = vpop.f32.mrf.mxu0  ;;  %v1830_v59 = vadd.f32 %v3656_v3, %v1781_v61 }
 0x1f3   : > { %v1272_v34 = vpop.f32.mrf.mxu2  ;;  %v1885_v53 = vmul.f32 %v1884_v8, %v1839_v46  ;;  %v1446_v26 = vadd.f32 %v1445_v15, %v1380_v23  ;;  %v1210_v12 = vpop.f32.mrf.mxu1  ;;  %v1932_v46 = vmul.f32 %v3781_v44, %v3749_v51  ;;  %v1661_v15 = vsub.f32 %v3727_v19, %v1642_v45 }
 0x1f4   : > { %v1273_v36 = vadd.f32 %v1272_v34, %v1207_v4  ;;  %v1344_v4 = vld [vmem:[#allocation3 + $0x18] sm:$0xff]  ;;  %v2128_v34 = vld [vmem:[%s3614_s18 + $0x8] sm:$0xff]  ;;  %v1942_v45 = vand.u32 2147483648, %v3749_v51 }
 0x1f5   : > { %v2111_v2 = vsub.f32 1.0, %v1885_v53  ;;  %v1489_v16 = vadd.f32 %v1446_v26, %v1343_v50  ;;  %v1914_v26 = vsel %vm3798_vm4, %v1913_v35, %v1909_v11  ;;  %v1933_v40 = vsub.f32 1.0, %v1932_v46 }
 0x1f6   : > { %v1312_v32 = vadd.f32 %v1273_v36, %v1053_v55  ;;  %v1692_v25 = vld [vmem:[#allocation3 + $0x8] sm:$0xff]  ;;  %v3811_v55 = vadd.f32 1.0, %v1829_v9  ;;  %v1920_v36 = vadd.f32 %v3757_v47, %v1919_v7 }
 0x1f7   : > { %v1708_v57 = vmul.f32 2.0, %v1692_v25  ;;  %v2143_v17 = vadd.f32 %v2111_v2, %v1675_v21  ;;  %1505 = vst.msk [vmem:[#allocation3 + $0x10] sm:$0xff] %vm395_vm15, %v1489_v16  ;;  %v3821_v2 = vpop.eup %2680 }
 0x1f8   : > { %1329 = vst.msk [vmem:[#allocation2 + $0x20] sm:$0xff] %vm395_vm15, %v1312_v32  ;;  %v1677_v32 = vmul.f32 0.005, %v1661_v15  ;;  %2682 = vrcp.f32 %v3811_v55  ;;  %v1947_v52 = vmul.f32 %v3821_v2, %v3775_v33  ;;  %v1924_v48 = vsel %vm3829_vm7, %v3757_v47, %v1920_v36 }
 0x1f9   : > { %v1840_v27 = vadd.f32 1.0, %v1708_v57  ;;  %v2159_v23 = vadd.f32 %v2143_v17, %v2127_v5  ;;  %v1643_v17 = vld [vmem:[#allocation2 + $0x18] sm:$0xff]  ;;  %v1786_v63 = vpop.permute.xlu1 %1785  ;;  %vm1952_vm12 = vweird.f32 %v3821_v2  ;;  %vm1966_vm1 = vweird.f32 %v3811_v55 }
 0x1fa   : > { %v1386_v28 = vpop.f32.mrf.mxu3  ;;  %v1448_v54 = vpop.f32.mrf.mxu0  ;;  %v1948_v61 = vsub.f32 1.0, %v1947_v52  ;;  %vm3903_vm13 = vmor %vm1951_vm11, %vm1952_vm12 }
 0x1fb   : > { %v1275_v60 = vpop.f32.mrf.mxu2  ;;  %v1900_v18 = vmul.f32 %v1899_v37, %v1840_v27  ;;  %2175 = vst.msk [vmem:[%s3614_s18] sm:$0xff] %vm395_vm15, %v2159_v23  ;;  %v1449_v6 = vadd.f32 %v1448_v54, %v1383_v0  ;;  %v1213_v49 = vpop.f32.mrf.mxu1 }
 0x1fc   : > { %v1276_v13 = vadd.f32 %v1275_v60, %v1210_v12  ;;  %v1927_v12 = vand.u32 2147483648, %v3719_v14  ;;  %v1934_v14 = vmul.f32 %v3781_v44, %v1933_v40  ;;  %v1940_v60 = vand.u32 2147483647, %v3749_v51 }
 0x1fd   : > { %v2112_v22 = vsub.f32 1.0, %v1900_v18  ;;  %v1490_v8 = vadd.f32 %v1449_v6, %v1344_v4  ;;  %v2129_v18 = vld [vmem:[%s3614_s18 + $0x10] sm:$0xff]  ;;  %v1949_v51 = vmul.f32 %v3821_v2, %v1948_v61 }
 0x1fe   : > { %v1313_v1 = vadd.f32 %v1276_v13, %v1054_v56  ;;  %v1693_v0 = vld [vmem:[#allocation3 + $0x10] sm:$0xff]  ;;  %v1662_v56 = vsub.f32 %v3727_v19, %v1643_v17  ;;  %v1935_v9 = vadd.f32 %v3781_v44, %v1934_v14  ;;  %vm3872_vm10 = vcmp.eq.f32.partialorder %v1940_v60, 8.507059e+37 }
 0x1ff   : > { %v1709_v30 = vmul.f32 2.0, %v1693_v0  ;;  %v2144_v50 = vadd.f32 %v2112_v22, %v1676_v29  ;;  %1506 = vst.msk [vmem:[#allocation3 + $0x18] sm:$0xff] %vm395_vm15, %v1490_v8  ;;  %v3852_v29 = vadd.f32 1.0, %v1830_v59  ;;  %v1346_v22 = vld [vmem:[#allocation3 + $0x28] sm:$0xff]  ;;  %v1644_v15 = vld [vmem:[#allocation2 + $0x20] sm:$0xff]  ;;  %v1950_v57 = vadd.f32 %v3821_v2, %v1949_v51 }
 0x200   : > { %1330 = vst.msk [vmem:[#allocation2 + $0x28] sm:$0xff] %vm395_vm15, %v1313_v1  ;;  %v1056_v1 = vld [vmem:[#allocation2 + $0x38] sm:$0xff]  ;;  %v1678_v7 = vmul.f32 0.005, %v1662_v56  ;;  %v1957_v17 = vand.u32 2147483648, %v3775_v33 }
 0x201   : > { %v1841_v53 = vadd.f32 1.0, %v1709_v30  ;;  %v2160_v62 = vadd.f32 %v2144_v50, %v2128_v34  ;;  %v1831_v50 = vadd.f32 %v3656_v3, %v1786_v63  ;;  %2684 = vrcp.f32 %v3852_v29 }
 0x202   : > { %v1389_v21 = vpop.f32.mrf.mxu3  ;;  %v1451_v20 = vpop.f32.mrf.mxu0  ;;  %v1972_v30 = vand.u32 2147483648, %v3811_v55  ;;  %vm1981_vm6 = vweird.f32 %v3852_v29 }
 0x203   : > { %v1278_v41 = vpop.f32.mrf.mxu2  ;;  %v1915_v16 = vmul.f32 %v1914_v26, %v1841_v53  ;;  %2176 = vst.msk [vmem:[%s3614_s18 + $0x8] sm:$0xff] %vm395_vm15, %v2160_v62  ;;  %v1452_v58 = vadd.f32 %v1451_v20, %v1386_v28  ;;  %v1216_v25 = vpop.f32.mrf.mxu1  ;;  %v1928_v28 = vor.u32 1.1754944e-38, %v1927_v12  ;;  %v1939_v12 = vsel %vm3866_vm0, %v3781_v44, %v1935_v9 }
 0x204   : > { %v1279_v43 = vadd.f32 %v1278_v41, %v1213_v49  ;;  %v3854_v49 = vpop.eup %2682  ;;  %v1663_v20 = vsub.f32 %v3727_v19, %v1644_v15  ;;  %v2130_v41 = vld [vmem:[%s3614_s18 + $0x18] sm:$0xff] }
 0x205   : > { %v2113_v37 = vsub.f32 1.0, %v1915_v16  ;;  %v1491_v5 = vadd.f32 %v1452_v58, %v1345_v39  ;;  %v1929_v31 = vsel %vm3835_vm3, %v1928_v28, %v1924_v48  ;;  %v1962_v26 = vmul.f32 %v3854_v49, %v3811_v55  ;;  %v1348_v15 = vld [vmem:[#allocation3 + $0x38] sm:$0xff] }
 0x206   : > { %v1314_v27 = vadd.f32 %v1279_v43, %v1055_v24  ;;  %v1694_v38 = vld [vmem:[#allocation3 + $0x18] sm:$0xff]  ;;  %v1955_v24 = vand.u32 2147483647, %v3775_v33  ;;  %v3889_v16 = vadd.f32 1.0, %v1831_v50  ;;  %v1679_v52 = vmul.f32 0.005, %v1663_v20 }
 0x207   : > { %v1710_v4 = vmul.f32 2.0, %v1694_v38  ;;  %v2145_v54 = vadd.f32 %v2113_v37, %v1677_v32  ;;  %1507 = vst.msk [vmem:[#allocation3 + $0x20] sm:$0xff] %vm395_vm15, %v1491_v5  ;;  %v1791_v32 = vpop.permute.xlu1 %1790  ;;  %v1963_v59 = vsub.f32 1.0, %v1962_v26  ;;  %v1347_v37 = vld [vmem:[#allocation3 + $0x30] sm:$0xff]  ;;  %v3895_v28 = vpop.eup %2684  ;;  %v1645_v56 = vld [vmem:[#allocation2 + $0x28] sm:$0xff]  ;;  %vm1967_vm2 = vweird.f32 %v3854_v49 }
 0x208   : > { %1331 = vst.msk [vmem:[#allocation2 + $0x30] sm:$0xff] %vm395_vm15, %v1314_v27  ;;  %v1057_v27 = vld [vmem:[#allocation2 + $0x40] sm:$0xff]  ;;  %2686 = vrcp.f32 %v3889_v16  ;;  %vm3909_vm14 = vcmp.eq.f32.partialorder %v1955_v24, 8.507059e+37  ;;  %vm3940_vm4 = vmor %vm1966_vm1, %vm1967_vm2  ;;  %vm1982_vm7 = vweird.f32 %v3895_v28  ;;  %vm1996_vm9 = vweird.f32 %v3889_v16 }
 0x209   : > { %v1842_v47 = vadd.f32 1.0, %v1710_v4  ;;  %v2161_v6 = vadd.f32 %v2145_v54, %v2129_v18  ;;  %v1832_v54 = vadd.f32 %v3656_v3, %v1791_v32  ;;  %v1964_v33 = vmul.f32 %v3854_v49, %v1963_v59  ;;  %vm3972_vm3 = vmor %vm1981_vm6, %vm1982_vm7 }
 0x20a   : > { %v1392_v13 = vpop.f32.mrf.mxu3  ;;  %v1454_v8 = vpop.f32.mrf.mxu0 }
 0x20b   : > { %v1281_v10 = vpop.f32.mrf.mxu2  ;;  %v1930_v35 = vmul.f32 %v1929_v31, %v1842_v47  ;;  %2177 = vst.msk [vmem:[%s3614_s18 + $0x10] sm:$0xff] %vm395_vm15, %v2161_v6  ;;  %v1455_v46 = vadd.f32 %v1454_v8, %v1389_v21  ;;  %v1219_v11 = vpop.f32.mrf.mxu1  ;;  %v1943_v21 = vor.u32 1.1754944e-38, %v1942_v45  ;;  %v1977_v31 = vmul.f32 %v3895_v28, %v3852_v29 }
 0x20c   : > { %v1282_v0 = vadd.f32 %v1281_v10, %v1216_v25  ;;  %v1954_v45 = vsel %vm3903_vm13, %v3821_v2, %v1950_v57  ;;  %v1664_v8 = vsub.f32 %v3727_v19, %v1645_v56  ;;  %v2131_v10 = vld [vmem:[%s3614_s18 + $0x20] sm:$0xff] }
 0x20d   : > { %v2114_v34 = vsub.f32 1.0, %v1930_v35  ;;  %v1492_v42 = vadd.f32 %v1455_v46, %v1346_v22  ;;  %v1944_v25 = vsel %vm3872_vm10, %v1943_v21, %v1939_v12  ;;  %v3926_v35 = vadd.f32 1.0, %v1832_v54 }
 0x20e   : > { %v1315_v53 = vadd.f32 %v1282_v0, %v1056_v1  ;;  %v1695_v36 = vld [vmem:[#allocation3 + $0x20] sm:$0xff]  ;;  %v1970_v1 = vand.u32 2147483647, %v3811_v55  ;;  %v1978_v50 = vsub.f32 1.0, %v1977_v31  ;;  %v3932_v62 = vpop.eup %2686  ;;  %v1680_v26 = vmul.f32 0.005, %v1664_v8 }
 0x20f   : > { %v1711_v40 = vmul.f32 2.0, %v1695_v36  ;;  %v2146_v39 = vadd.f32 %v2114_v34, %v1678_v7  ;;  %1508 = vst.msk [vmem:[#allocation3 + $0x28] sm:$0xff] %vm395_vm15, %v1492_v42  ;;  %v1058_v42 = vld [vmem:[#allocation2 + $0x48] sm:$0xff]  ;;  %v1796_v21 = vpop.permute.xlu1 %1795  ;;  %v1646_v12 = vld [vmem:[#allocation2 + $0x30] sm:$0xff]  ;;  %2688 = vrcp.f32 %v3926_v35  ;;  %vm1997_vm0 = vweird.f32 %v3932_v62 }
 0x210   : > { %1332 = vst.msk [vmem:[#allocation2 + $0x38] sm:$0xff] %vm395_vm15, %v1315_v53  ;;  %v1833_v24 = vadd.f32 %v3656_v3, %v1796_v21  ;;  %v1665_v55 = vsub.f32 %v3727_v19, %v1646_v12  ;;  %vm1971_vm5 = vcmp.eq.f32.partialorder %v1970_v1, 8.507059e+37  ;;  %v2133_v21 = vld [vmem:[%s3614_s18 + $0x30] sm:$0xff]  ;;  %vm4009_vm10 = vmor %vm1996_vm9, %vm1997_vm0  ;;  %vm2011_vm12 = vweird.f32 %v3926_v35 }
 0x211   : > { %v1843_v44 = vadd.f32 1.0, %v1711_v40  ;;  %v2162_v58 = vadd.f32 %v2146_v39, %v2130_v41  ;;  %v2017_v8 = vand.u32 2147483648, %v3926_v35 }
 0x212   : > { %v1395_v43 = vpop.f32.mrf.mxu3  ;;  %v1457_v5 = vpop.f32.mrf.mxu0  ;;  %v1681_v56 = vmul.f32 0.005, %v1665_v55 }
 0x213   : > { %v1284_v23 = vpop.f32.mrf.mxu2  ;;  %v1945_v14 = vmul.f32 %v1944_v25, %v1843_v44  ;;  %2178 = vst.msk [vmem:[%s3614_s18 + $0x18] sm:$0xff] %vm395_vm15, %v2162_v58  ;;  %v1458_v38 = vadd.f32 %v1457_v5, %v1392_v13  ;;  %v1222_v63 = vpop.f32.mrf.mxu1  ;;  %v1958_v13 = vor.u32 1.1754944e-38, %v1957_v17  ;;  %v1973_v58 = vor.u32 1.1754944e-38, %v1972_v30 }
 0x214   : > { %v1285_v48 = vadd.f32 %v1284_v23, %v1219_v11  ;;  %v1965_v11 = vadd.f32 %v3854_v49, %v1964_v33  ;;  %v1992_v25 = vmul.f32 %v3932_v62, %v3889_v16  ;;  %v1985_v5 = vand.u32 2147483647, %v3852_v29  ;;  %v2132_v23 = vld [vmem:[%s3614_s18 + $0x28] sm:$0xff] }
 0x215   : > { %v2115_v60 = vsub.f32 1.0, %v1945_v14  ;;  %v1493_v18 = vadd.f32 %v1458_v38, %v1347_v37  ;;  %v1959_v0 = vsel %vm3909_vm14, %v1958_v13, %v1954_v45  ;;  %v1801_v14 = vpop.permute.xlu0 %1800  ;;  %v3963_v13 = vpop.eup %2688 }
 0x216   : > { %v1316_v47 = vadd.f32 %v1285_v48, %v1057_v27  ;;  %v1696_v9 = vld [vmem:[#allocation3 + $0x28] sm:$0xff]  ;;  %v1969_v17 = vsel %vm3940_vm4, %v3854_v49, %v1965_v11  ;;  %v1987_v27 = vand.u32 2147483648, %v3852_v29  ;;  %v1993_v54 = vsub.f32 1.0, %v1992_v25 }
 0x217   : > { %v1712_v61 = vmul.f32 2.0, %v1696_v9  ;;  %v2147_v22 = vadd.f32 %v2115_v60, %v1679_v52  ;;  %1509 = vst.msk [vmem:[#allocation3 + $0x30] sm:$0xff] %vm395_vm15, %v1493_v18  ;;  %v3960_v52 = vadd.f32 1.0, %v1833_v24  ;;  %v1349_v60 = vld [vmem:[#allocation3 + $0x40] sm:$0xff]  ;;  %v1647_v9 = vld [vmem:[#allocation2 + $0x38] sm:$0xff]  ;;  %v1834_v45 = vadd.f32 %v3656_v3, %v1801_v14  ;;  %v1350_v24 = vld [vmem:[#allocation3 + $0x48] sm:$0xff] }
 0x218   : > { %1333 = vst.msk [vmem:[#allocation2 + $0x40] sm:$0xff] %vm395_vm15, %v1316_v47  ;;  %v1059_v47 = vld [vmem:[#allocation2 + $0x50] sm:$0xff]  ;;  %vm3976_vm8 = vcmp.eq.f32.partialorder %v1985_v5, 8.507059e+37  ;;  %v2007_v29 = vmul.f32 %v3963_v13, %v3926_v35  ;;  %v1666_v30 = vsub.f32 %v3727_v19, %v1647_v9  ;;  %vm2012_vm13 = vweird.f32 %v3963_v13 }
 0x219   : > { %v1844_v7 = vadd.f32 1.0, %v1712_v61  ;;  %v2163_v2 = vadd.f32 %v2147_v22, %v2131_v10  ;;  %2690 = vrcp.f32 %v3960_v52  ;;  %vm4045_vm14 = vmor %vm2011_vm12, %vm2012_vm13  ;;  %vm2026_vm2 = vweird.f32 %v3960_v52 }
 0x21a   : > { %v1398_v46 = vpop.f32.mrf.mxu3  ;;  %v1460_v34 = vpop.f32.mrf.mxu0  ;;  %v1682_v20 = vmul.f32 0.005, %v1666_v30 }
 0x21b   : > { %v1287_v53 = vpop.f32.mrf.mxu2  ;;  %v1960_v51 = vmul.f32 %v1959_v0, %v1844_v7  ;;  %2179 = vst.msk [vmem:[%s3614_s18 + $0x20] sm:$0xff] %vm395_vm15, %v2163_v2  ;;  %v1461_v36 = vadd.f32 %v1460_v34, %v1395_v43  ;;  %v1225_v39 = vpop.f32.mrf.mxu1  ;;  %v1979_v43 = vmul.f32 %v3895_v28, %v1978_v50  ;;  %v1994_v0 = vmul.f32 %v3932_v62, %v1993_v54 }
 0x21c   : > { %v1288_v40 = vadd.f32 %v1287_v53, %v1222_v63  ;;  %v1974_v63 = vsel %vm1971_vm5, %v1973_v58, %v1969_v17  ;;  %v2002_v53 = vand.u32 2147483648, %v3889_v16 }
 0x21d   : > { %v2116_v41 = vsub.f32 1.0, %v1960_v51  ;;  %v1494_v32 = vadd.f32 %v1461_v36, %v1348_v15  ;;  %v1980_v4 = vadd.f32 %v3895_v28, %v1979_v43  ;;  %v2000_v51 = vand.u32 2147483647, %v3889_v16  ;;  %v1806_v43 = vpop.permute.xlu1 %1805 }
 0x21e   : > { %v1317_v44 = vadd.f32 %v1288_v40, %v1058_v42  ;;  %v1697_v57 = vld [vmem:[#allocation3 + $0x30] sm:$0xff]  ;;  %v3989_v42 = vadd.f32 1.0, %v1834_v45  ;;  %v1995_v40 = vadd.f32 %v3932_v62, %v1994_v0  ;;  %v1835_v5 = vadd.f32 %v3656_v3, %v1806_v43  ;;  %v1811_v45 = vpop.permute.xlu2 %1810 }
 0x21f   : > { %v1713_v59 = vmul.f32 2.0, %v1697_v57  ;;  %v2148_v37 = vadd.f32 %v2116_v41, %v1680_v26  ;;  %1510 = vst.msk [vmem:[#allocation3 + $0x38] sm:$0xff] %vm395_vm15, %v1494_v32  ;;  %v1984_v50 = vsel %vm3972_vm3, %v3895_v28, %v1980_v4  ;;  %v1060_v32 = vld [vmem:[#allocation2 + $0x58] sm:$0xff]  ;;  %v4000_v58 = vpop.eup %2690  ;;  %vm4014_vm11 = vcmp.eq.f32.partialorder %v2000_v51, 8.507059e+37 }
 0x220   : > { %1334 = vst.msk [vmem:[#allocation2 + $0x48] sm:$0xff] %vm395_vm15, %v1317_v44  ;;  %2692 = vrcp.f32 %v3989_v42  ;;  %v2022_v16 = vmul.f32 %v4000_v58, %v3960_v52  ;;  %v1999_v4 = vsel %vm4009_vm10, %v3932_v62, %v1995_v40  ;;  %vm2027_vm4 = vweird.f32 %v4000_v58 }
 0x221   : > { %v1845_v49 = vadd.f32 1.0, %v1713_v59  ;;  %v2164_v38 = vadd.f32 %v2148_v37, %v2132_v23  ;;  %v1648_v37 = vld [vmem:[#allocation2 + $0x40] sm:$0xff]  ;;  %vm4082_vm5 = vmor %vm2026_vm2, %vm2027_vm4  ;;  %vm2041_vm7 = vweird.f32 %v3989_v42 }
 0x222   : > { %v1401_v48 = vpop.f32.mrf.mxu3  ;;  %v1463_v18 = vpop.f32.mrf.mxu0  ;;  %v2023_v1 = vsub.f32 1.0, %v2022_v16 }
 0x223   : > { %v1290_v6 = vpop.f32.mrf.mxu2  ;;  %v1975_v33 = vmul.f32 %v1974_v63, %v1845_v49  ;;  %2180 = vst.msk [vmem:[%s3614_s18 + $0x28] sm:$0xff] %vm395_vm15, %v2164_v38  ;;  %v1464_v31 = vadd.f32 %v1463_v18, %v1398_v46  ;;  %v1228_v22 = vpop.f32.mrf.mxu1  ;;  %v1988_v46 = vor.u32 1.1754944e-38, %v1987_v27  ;;  %v2003_v38 = vor.u32 1.1754944e-38, %v2002_v53 }
 0x224   : > { %v1291_v61 = vadd.f32 %v1290_v6, %v1225_v39  ;;  %v2008_v39 = vsub.f32 1.0, %v2007_v29  ;;  %v2015_v18 = vand.u32 2147483647, %v3926_v35  ;;  %v1836_v53 = vadd.f32 %v3656_v3, %v1811_v45 }
 0x225   : > { %v2117_v10 = vsub.f32 1.0, %v1975_v33  ;;  %v1495_v7 = vadd.f32 %v1464_v31, %v1349_v60  ;;  %v1989_v12 = vsel %vm3976_vm8, %v1988_v46, %v1984_v50  ;;  %v1667_v60 = vsub.f32 %v3727_v19, %v1648_v37 }
 0x226   : > { %v1318_v2 = vadd.f32 %v1291_v61, %v1059_v47  ;;  %v1698_v11 = vld [vmem:[#allocation3 + $0x38] sm:$0xff]  ;;  %v4030_v6 = vpop.eup %2692  ;;  %v4033_v33 = vadd.f32 1.0, %v1835_v5  ;;  %v2004_v61 = vsel %vm4014_vm11, %v2003_v38, %v1999_v4  ;;  %vm4053_vm1 = vcmp.eq.f32.partialorder %v2015_v18, 8.507059e+37 }
 0x227   : > { %v1714_v15 = vmul.f32 2.0, %v1698_v11  ;;  %v2149_v34 = vadd.f32 %v2117_v10, %v1681_v56  ;;  %1511 = vst.msk [vmem:[#allocation3 + $0x40] sm:$0xff] %vm395_vm15, %v1495_v7  ;;  %v2134_v47 = vld [vmem:[%s3614_s18 + $0x38] sm:$0xff]  ;;  %v1351_v10 = vld [vmem:[#allocation3 + $0x50] sm:$0xff]  ;;  %v1683_v0 = vmul.f32 0.005, %v1667_v60  ;;  %vm2042_vm3 = vweird.f32 %v4030_v6 }
 0x228   : > { %1335 = vst.msk [vmem:[#allocation2 + $0x50] sm:$0xff] %vm395_vm15, %v1318_v2  ;;  %v1061_v11 = vld [vmem:[#allocation2 + $0x60] sm:$0xff]  ;;  %2694 = vrcp.f32 %v4033_v33  ;;  %v2018_v35 = vor.u32 1.1754944e-38, %v2017_v8  ;;  %v4065_v43 = vadd.f32 1.0, %v1836_v53  ;;  %v2032_v37 = vand.u32 2147483648, %v3960_v52  ;;  %v1352_v5 = vld [vmem:[#allocation3 + $0x58] sm:$0xff]  ;;  %vm4112_vm8 = vmor %vm2041_vm7, %vm2042_vm3 }
 0x229   : > { %v1846_v26 = vadd.f32 1.0, %v1714_v15  ;;  %v2165_v28 = vadd.f32 %v2149_v34, %v2133_v21  ;;  %v1649_v15 = vld [vmem:[#allocation2 + $0x48] sm:$0xff]  ;;  %v2037_v34 = vmul.f32 %v4030_v6, %v3989_v42  ;;  %v1816_v21 = vpop.permute.xlu1 %1815  ;;  %vm2056_vm0 = vweird.f32 %v4033_v33 }
 0x22a   : > { %v1404_v36 = vpop.f32.mrf.mxu3  ;;  %v1466_v41 = vpop.f32.mrf.mxu0  ;;  %2696 = vrcp.f32 %v4065_v43  ;;  %vm2071_vm13 = vweird.f32 %v4065_v43 }
 0x22b   : > { %v1293_v44 = vpop.f32.mrf.mxu2  ;;  %v1990_v25 = vmul.f32 %v1989_v12, %v1846_v26  ;;  %2181 = vst.msk [vmem:[%s3614_s18 + $0x30] sm:$0xff] %vm395_vm15, %v2165_v28  ;;  %v1467_v57 = vadd.f32 %v1466_v41, %v1401_v48  ;;  %v1231_v17 = vpop.f32.mrf.mxu1  ;;  %v2009_v48 = vmul.f32 %v3963_v13, %v2008_v39  ;;  %v2024_v12 = vmul.f32 %v4000_v58, %v2023_v1 }
 0x22c   : > { %v1294_v55 = vadd.f32 %v1293_v44, %v1228_v22  ;;  %v1668_v41 = vsub.f32 %v3727_v19, %v1649_v15  ;;  %v2038_v44 = vsub.f32 1.0, %v2037_v34 }
 0x22d   : > { %v2118_v27 = vsub.f32 1.0, %v1990_v25  ;;  %v1496_v23 = vadd.f32 %v1467_v57, %v1350_v24  ;;  %v2010_v22 = vadd.f32 %v3963_v13, %v2009_v48  ;;  %v2030_v25 = vand.u32 2147483647, %v3960_v52 }
 0x22e   : > { %v1319_v14 = vadd.f32 %v1294_v55, %v1060_v32  ;;  %v1699_v63 = vld [vmem:[#allocation3 + $0x40] sm:$0xff]  ;;  %v2025_v59 = vadd.f32 %v4000_v58, %v2024_v12  ;;  %v4074_v49 = vpop.eup %2694  ;;  %v1684_v48 = vmul.f32 0.005, %v1668_v41  ;;  %v2039_v60 = vmul.f32 %v4030_v6, %v2038_v44 }
 0x22f   : > { %v1715_v54 = vmul.f32 2.0, %v1699_v63  ;;  %v2150_v56 = vadd.f32 %v2118_v27, %v1682_v20  ;;  %1512 = vst.msk [vmem:[#allocation3 + $0x48] sm:$0xff] %vm395_vm15, %v1496_v23  ;;  %v2014_v3 = vsel %vm4045_vm14, %v3963_v13, %v2010_v22  ;;  %v2135_v32 = vld [vmem:[%s3614_s18 + $0x40] sm:$0xff]  ;;  %v1062_v23 = vld [vmem:[#allocation2 + $0x68] sm:$0xff]  ;;  %v1650_v18 = vld [vmem:[#allocation2 + $0x50] sm:$0xff]  ;;  %vm4088_vm6 = vcmp.eq.f32.partialorder %v2030_v25, 8.507059e+37 }
 0x230   : > { %1336 = vst.msk [vmem:[#allocation2 + $0x58] sm:$0xff] %vm395_vm15, %v1319_v14  ;;  %v2033_v52 = vor.u32 1.1754944e-38, %v2032_v37  ;;  %v2052_v45 = vmul.f32 %v4074_v49, %v4033_v33  ;;  %v2029_v22 = vsel %vm4082_vm5, %v4000_v58, %v2025_v59  ;;  %v4116_v34 = vpop.eup %2696  ;;  %vm2057_vm10 = vweird.f32 %v4074_v49 }
 0x231   : > { %v1847_v62 = vadd.f32 1.0, %v1715_v54  ;;  %v2166_v31 = vadd.f32 %v2150_v56, %v2134_v47  ;;  %v2704_v54 = vld [vmem:[#allocation5] ss:$0 sm:$0xff]  ;;  %v1821_v8 = vpop.permute.xlu1 %1820  ;;  %vm4152_vm11 = vmor %vm2056_vm0, %vm2057_vm10  ;;  %vm2072_vm14 = vweird.f32 %v4116_v34 }
 0x232   : > { %v1407_v9 = vpop.f32.mrf.mxu3  ;;  %v1469_v7 = vpop.f32.mrf.mxu0  ;;  %v1837_v56 = vadd.f32 %v2704_v54, %v1816_v21  ;;  %v2034_v53 = vsel %vm4088_vm6, %v2033_v52, %v2029_v22  ;;  %v2053_v21 = vsub.f32 1.0, %v2052_v45 }
 0x233   : > { %v1296_v2 = vpop.f32.mrf.mxu2  ;;  %v2005_v46 = vmul.f32 %v2004_v61, %v1847_v62  ;;  %2182 = vst.msk [vmem:[%s3614_s18 + $0x38] sm:$0xff] %vm395_vm15, %v2166_v31  ;;  %v1470_v29 = vadd.f32 %v1469_v7, %v1404_v36  ;;  %v1234_v28 = vpop.f32.mrf.mxu1  ;;  %v1669_v7 = vsub.f32 %v3727_v19, %v1650_v18  ;;  %v1063_v36 = vld [vmem:[#allocation2 + $0x70] sm:$0xff]  ;;  %v1064_v18 = vld [vmem:[#allocation2 + $0x78] sm:$0xff] }
 0x234   : > { %v1297_v30 = vadd.f32 %v1296_v2, %v1231_v17  ;;  %v2019_v17 = vsel %vm4053_vm1, %v2018_v35, %v2014_v3  ;;  %vm4186_vm1 = vmor %vm2071_vm13, %vm2072_vm14 }
 0x235   : > { %v2119_v51 = vsub.f32 1.0, %v2005_v46  ;;  %v1497_v26 = vadd.f32 %v1470_v29, %v1351_v10  ;;  %v2136_v46 = vld [vmem:[%s3614_s18 + $0x48] sm:$0xff]  ;;  %v2040_v29 = vadd.f32 %v4030_v6, %v2039_v60 }
 0x236   : > { %v1700_v40 = vld [vmem:[#allocation3 + $0x48] sm:$0xff]  ;;  %v1320_v39 = vadd.f32 %v1297_v30, %v1061_v11  ;;  %v2045_v11 = vand.u32 2147483647, %v3989_v42  ;;  %v2047_v30 = vand.u32 2147483648, %v3989_v42 }
 0x237   : > { %v1716_v20 = vmul.f32 2.0, %v1700_v40  ;;  %v2151_v24 = vadd.f32 %v2119_v51, %v1683_v0  ;;  %1513 = vst.msk [vmem:[#allocation3 + $0x50] sm:$0xff] %vm395_vm15, %v1497_v26  ;;  %v4102_v0 = vadd.f32 1.0, %v1837_v56  ;;  %v1838_v51 = vadd.f32 %v2704_v54, %v1821_v8  ;;  %v1353_v26 = vld [vmem:[#allocation3 + $0x60] sm:$0xff]  ;;  %v1651_v41 = vld [vmem:[#allocation2 + $0x58] sm:$0xff]  ;;  %v1354_v56 = vld [vmem:[#allocation3 + $0x68] sm:$0xff] }
 0x238   : > { %1337 = vst.msk [vmem:[#allocation2 + $0x60] sm:$0xff] %vm395_vm15, %v1320_v39  ;;  %v1685_v40 = vmul.f32 0.005, %v1669_v7  ;;  %v2044_v3 = vsel %vm4112_vm8, %v4030_v6, %v2040_v29  ;;  %vm4126_vm9 = vcmp.eq.f32.partialorder %v2045_v11, 8.507059e+37  ;;  %v1670_v37 = vsub.f32 %v3727_v19, %v1651_v41 }
 0x239   : > { %v1848_v13 = vadd.f32 1.0, %v1716_v20  ;;  %v2167_v57 = vadd.f32 %v2151_v24, %v2135_v32  ;;  %2698 = vrcp.f32 %v4102_v0  ;;  %v2048_v24 = vor.u32 1.1754944e-38, %v2047_v30 }
 0x23a   : > { %v1410_v55 = vpop.f32.mrf.mxu3  ;;  %v1472_v27 = vpop.f32.mrf.mxu0  ;;  %v2062_v54 = vand.u32 2147483648, %v4033_v33  ;;  %vm2086_vm4 = vweird.f32 %v4102_v0 }
 0x23b   : > { %v1299_v14 = vpop.f32.mrf.mxu2  ;;  %v2020_v38 = vmul.f32 %v2019_v17, %v1848_v13  ;;  %2183 = vst.msk [vmem:[%s3614_s18 + $0x40] sm:$0xff] %vm395_vm15, %v2167_v57  ;;  %v1473_v16 = vadd.f32 %v1472_v27, %v1407_v9  ;;  %v1237_v2 = vpop.f32.mrf.mxu1  ;;  %v2067_v13 = vmul.f32 %v4116_v34, %v4065_v43  ;;  %v2060_v27 = vand.u32 2147483647, %v4033_v33 }
 0x23c   : > { %v1300_v63 = vadd.f32 %v1299_v14, %v1234_v28  ;;  %v2049_v14 = vsel %vm4126_vm9, %v2048_v24, %v2044_v3 }
 0x23d   : > { %v2120_v62 = vsub.f32 1.0, %v2020_v38  ;;  %v1498_v31 = vadd.f32 %v1473_v16, %v1352_v5  ;;  %v2137_v5 = vld [vmem:[%s3614_s18 + $0x50] sm:$0xff]  ;;  %v2068_v16 = vsub.f32 1.0, %v2067_v13  ;;  %vm4158_vm12 = vcmp.eq.f32.partialorder %v2060_v27, 8.507059e+37 }
 0x23e   : > { %v1321_v9 = vadd.f32 %v1300_v63, %v1062_v23  ;;  %v1701_v61 = vld [vmem:[#allocation3 + $0x50] sm:$0xff]  ;;  %v4139_v23 = vadd.f32 1.0, %v1838_v51 }
 0x23f   : > { %v1717_v1 = vmul.f32 2.0, %v1701_v61  ;;  %v2152_v10 = vadd.f32 %v2120_v62, %v1684_v48  ;;  %1514 = vst.msk [vmem:[#allocation3 + $0x58] sm:$0xff] %vm395_vm15, %v1498_v31  ;;  %v4144_v4 = vpop.eup %2698  ;;  %v1652_v22 = vld [vmem:[#allocation2 + $0x60] sm:$0xff]  ;;  %v2069_v33 = vmul.f32 %v4116_v34, %v2068_v16 }
 0x240   : > { %1338 = vst.msk [vmem:[#allocation2 + $0x68] sm:$0xff] %vm395_vm15, %v1321_v9  ;;  %v1686_v9 = vmul.f32 0.005, %v1670_v37  ;;  %2700 = vrcp.f32 %v4139_v23  ;;  %v2139_v37 = vld [vmem:[%s3614_s18 + $0x60] sm:$0xff]  ;;  %vm2087_vm5 = vweird.f32 %v4144_v4  ;;  %vm2101_vm3 = vweird.f32 %v4139_v23 }
 0x241   : > { %v1849_v58 = vadd.f32 1.0, %v1717_v1  ;;  %v2168_v50 = vadd.f32 %v2152_v10, %v2136_v46  ;;  %v2082_v46 = vmul.f32 %v4144_v4, %v4102_v0  ;;  %vm4208_vm6 = vmor %vm2086_vm4, %vm2087_vm5 }
 0x242   : > { %v1475_v28 = vpop.f32.mrf.mxu0  ;;  %v1413_v32 = vpop.f32.mrf.mxu3 }
 0x243   : > { %v1302_v35 = vpop.f32.mrf.mxu2  ;;  %v2035_v12 = vmul.f32 %v2034_v53, %v1849_v58  ;;  %2184 = vst.msk [vmem:[%s3614_s18 + $0x48] sm:$0xff] %vm395_vm15, %v2168_v50  ;;  %v1476_v42 = vadd.f32 %v1475_v28, %v1410_v55  ;;  %v2054_v55 = vmul.f32 %v4074_v49, %v2053_v21  ;;  %v1240_v63 = vpop.f32.mrf.mxu1  ;;  %v4172_v50 = vld [vmem:[#allocation4] ss:$0 sm:$0xff]  ;;  %v2077_v53 = vand.u32 2147483648, %v4065_v43 }
 0x244   : > { %v1303_v39 = vadd.f32 %v1302_v35, %v1237_v2  ;;  %v2063_v2 = vor.u32 1.1754944e-38, %v2062_v54  ;;  %v1671_v15 = vsub.f32 %v4172_v50, %v1652_v22  ;;  %v2075_v28 = vand.u32 2147483647, %v4065_v43 }
 0x245   : > { %v2121_v44 = vsub.f32 1.0, %v2035_v12  ;;  %v1499_v25 = vadd.f32 %v1476_v42, %v1353_v26  ;;  %v2055_v19 = vadd.f32 %v4074_v49, %v2054_v55  ;;  %v2070_v26 = vadd.f32 %v4116_v34, %v2069_v33 }
 0x246   : > { %v1322_v57 = vadd.f32 %v1303_v39, %v1063_v36  ;;  %v1702_v17 = vld [vmem:[#allocation3 + $0x58] sm:$0xff]  ;;  %v4180_v36 = vpop.eup %2700  ;;  %v2083_v39 = vsub.f32 1.0, %v2082_v46  ;;  %v1687_v20 = vmul.f32 0.005, %v1671_v15  ;;  %v2078_v41 = vor.u32 1.1754944e-38, %v2077_v53 }
 0x247   : > { %v1718_v6 = vmul.f32 2.0, %v1702_v17  ;;  %v2153_v59 = vadd.f32 %v2121_v44, %v1685_v40  ;;  %1515 = vst.msk [vmem:[#allocation3 + $0x60] sm:$0xff] %vm395_vm15, %v1499_v25  ;;  %v2059_v7 = vsel %vm4152_vm11, %v4074_v49, %v2055_v19  ;;  %v2138_v49 = vld [vmem:[%s3614_s18 + $0x58] sm:$0xff]  ;;  %v1355_v40 = vld [vmem:[#allocation3 + $0x70] sm:$0xff]  ;;  %v2074_v43 = vsel %vm4186_vm1, %v4116_v34, %v2070_v26 }
 0x248   : > { %1339 = vst.msk [vmem:[#allocation2 + $0x70] sm:$0xff] %vm395_vm15, %v1322_v57  ;;  %v2064_v35 = vsel %vm4158_vm12, %v2063_v2, %v2059_v7  ;;  %vm2076_vm2 = vcmp.eq.f32.partialorder %v2075_v28, 8.507059e+37  ;;  %v2097_v13 = vmul.f32 %v4180_v36, %v4139_v23  ;;  %v2084_v55 = vmul.f32 %v4144_v4, %v2083_v39  ;;  %v2141_v28 = vld [vmem:[%s3614_s18 + $0x70] sm:$0xff] }
 0x249   : > { %v1850_v38 = vadd.f32 1.0, %v1718_v6  ;;  %v2169_v48 = vadd.f32 %v2153_v59, %v2137_v5  ;;  %v2079_v5 = vsel %vm2076_vm2, %v2078_v41, %v2074_v43  ;;  %vm2102_vm8 = vweird.f32 %v4180_v36 }
 0x24a   : > { %v1478_v60 = vpop.f32.mrf.mxu0  ;;  %v1416_v11 = vpop.f32.mrf.mxu3  ;;  %v2098_v16 = vsub.f32 1.0, %v2097_v13  ;;  %v2085_v54 = vadd.f32 %v4144_v4, %v2084_v55  ;;  %v2105_v46 = vand.u32 2147483647, %v4139_v23  ;;  %vm2103_vm9 = vmor %vm2101_vm3, %vm2102_vm8 }
 0x24b   : > { %v1305_v47 = vpop.f32.mrf.mxu2  ;;  %v2050_v31 = vmul.f32 %v2049_v14, %v1850_v38  ;;  %2185 = vst.msk [vmem:[%s3614_s18 + $0x50] sm:$0xff] %vm395_vm15, %v2169_v48  ;;  %v1479_v52 = vadd.f32 %v1478_v60, %v1413_v32  ;;  %v1653_v32 = vld [vmem:[#allocation2 + $0x68] sm:$0xff]  ;;  %v2090_v38 = vand.u32 2147483647, %v4102_v0  ;;  %v2092_v48 = vand.u32 2147483648, %v4102_v0 }
 0x24c   : > { %v1306_v45 = vadd.f32 %v1305_v47, %v1240_v63  ;;  %v1672_v59 = vsub.f32 %v4172_v50, %v1653_v32  ;;  %v1356_v63 = vld [vmem:[#allocation3 + $0x78] sm:$0xff]  ;;  %v2089_v61 = vsel %vm4208_vm6, %v4144_v4, %v2085_v54  ;;  %vm2106_vm0 = vcmp.eq.f32.partialorder %v2105_v46, 8.507059e+37 }
 0x24d   : > { %v2122_v8 = vsub.f32 1.0, %v2050_v31  ;;  %v1500_v1 = vadd.f32 %v1479_v52, %v1354_v56  ;;  %vm2091_vm7 = vcmp.eq.f32.partialorder %v2090_v38, 8.507059e+37  ;;  %v2093_v0 = vor.u32 1.1754944e-38, %v2092_v48 }
 0x24e   : > { %v1323_v10 = vadd.f32 %v1306_v45, %v1064_v18  ;;  %v1703_v29 = vld [vmem:[#allocation3 + $0x60] sm:$0xff]  ;;  %v1688_v60 = vmul.f32 0.005, %v1672_v59  ;;  %v2099_v52 = vmul.f32 %v4180_v36, %v2098_v16 }
 0x24f   : > { %v1719_v30 = vmul.f32 2.0, %v1703_v29  ;;  %v2154_v58 = vadd.f32 %v2122_v8, %v1686_v9  ;;  %1516 = vst.msk [vmem:[#allocation3 + $0x68] sm:$0xff] %vm395_vm15, %v1500_v1  ;;  %v1654_v62 = vld [vmem:[#allocation2 + $0x70] sm:$0xff]  ;;  %v2140_v1 = vld [vmem:[%s3614_s18 + $0x68] sm:$0xff]  ;;  %v2094_v2 = vsel %vm2091_vm7, %v2093_v0, %v2089_v61  ;;  %v2107_v29 = vand.u32 2147483648, %v4139_v23 }
 0x250   : > { %1340 = vst.msk [vmem:[#allocation2 + $0x78] sm:$0xff] %vm395_vm15, %v1323_v10  ;;  %v1673_v33 = vsub.f32 %v4172_v50, %v1654_v62  ;;  %v2100_v4 = vadd.f32 %v4180_v36, %v2099_v52 }
 0x251   : > { %v1851_v21 = vadd.f32 1.0, %v1719_v30  ;;  %v2170_v51 = vadd.f32 %v2154_v58, %v2138_v49  ;;  %v2108_v49 = vor.u32 1.1754944e-38, %v2107_v29 }
 0x252   : > { %v1481_v42 = vpop.f32.mrf.mxu0  ;;  %v1419_v27 = vpop.f32.mrf.mxu3  ;;  %v1689_v30 = vmul.f32 0.005, %v1673_v33 }
 0x253   : > { %v2065_v3 = vmul.f32 %v2064_v35, %v1851_v21  ;;  %2186 = vst.msk [vmem:[%s3614_s18 + $0x58] sm:$0xff] %vm395_vm15, %v2170_v51  ;;  %v1482_v24 = vadd.f32 %v1481_v42, %v1416_v11  ;;  %v2104_v21 = vsel %vm2103_vm9, %v4180_v36, %v2100_v4 }
 0x255   : > { %v2123_v44 = vsub.f32 1.0, %v2065_v3  ;;  %v1501_v25 = vadd.f32 %v1482_v24, %v1355_v40  ;;  %v2109_v40 = vsel %vm2106_vm0, %v2108_v49, %v2104_v21  ;;  %v2142_v24 = vld [vmem:[%s3614_s18 + $0x78] sm:$0xff] }
 0x256   : > { %v1704_v57 = vld [vmem:[#allocation3 + $0x68] sm:$0xff] }
 0x257   : > { %v1720_v17 = vmul.f32 2.0, %v1704_v57  ;;  %v2155_v6 = vadd.f32 %v2123_v44, %v1687_v20  ;;  %1517 = vst.msk [vmem:[#allocation3 + $0x70] sm:$0xff] %vm395_vm15, %v1501_v25  ;;  %v1655_v58 = vld [vmem:[#allocation2 + $0x78] sm:$0xff] }
 0x258   : > { %v1674_v23 = vsub.f32 %v4172_v50, %v1655_v58 }
 0x259   : > { %v1852_v34 = vadd.f32 1.0, %v1720_v17  ;;  %v2171_v14 = vadd.f32 %v2155_v6, %v2139_v37 }
 0x25a   : > { %v1484_v19 = vpop.f32.mrf.mxu0  ;;  %v1690_v39 = vmul.f32 0.005, %v1674_v23 }
 0x25b   : > { %v2080_v56 = vmul.f32 %v2079_v5, %v1852_v34  ;;  %2187 = vst.msk [vmem:[%s3614_s18 + $0x60] sm:$0xff] %vm395_vm15, %v2171_v14  ;;  %v1485_v18 = vadd.f32 %v1484_v19, %v1419_v27 }
 0x25d   : > { %v2124_v31 = vsub.f32 1.0, %v2080_v56  ;;  %v1502_v9 = vadd.f32 %v1485_v18, %v1356_v63 }
 0x25e   : > { %v1705_v45 = vld [vmem:[#allocation3 + $0x70] sm:$0xff] }
 0x25f   : > { %v1721_v22 = vmul.f32 2.0, %v1705_v45  ;;  %v2156_v8 = vadd.f32 %v2124_v31, %v1688_v60  ;;  %1518 = vst.msk [vmem:[#allocation3 + $0x78] sm:$0xff] %vm395_vm15, %v1502_v9 }
 0x261   : > { %v1853_v10 = vadd.f32 1.0, %v1721_v22  ;;  %v2172_v7 = vadd.f32 %v2156_v8, %v2140_v1 }
 0x263   : > { %v2095_v11 = vmul.f32 %v2094_v2, %v1853_v10  ;;  %2188 = vst.msk [vmem:[%s3614_s18 + $0x68] sm:$0xff] %vm395_vm15, %v2172_v7 }
 0x265   : > { %v2125_v15 = vsub.f32 1.0, %v2095_v11 }
 0x266   : > { %v1706_v53 = vld [vmem:[#allocation3 + $0x78] sm:$0xff] }
 0x267   : > { %v1722_v51 = vmul.f32 2.0, %v1706_v53  ;;  %v2157_v26 = vadd.f32 %v2125_v15, %v1689_v30 }
 0x269   : > { %v1854_v35 = vadd.f32 1.0, %v1722_v51  ;;  %v2173_v12 = vadd.f32 %v2157_v26, %v2141_v28 }
 0x26b   : > { %v2110_v42 = vmul.f32 %v2109_v40, %v1854_v35  ;;  %2189 = vst.msk [vmem:[%s3614_s18 + $0x70] sm:$0xff] %vm395_vm15, %v2173_v12 }
 0x26d   : > { %v2126_v3 = vsub.f32 1.0, %v2110_v42 }
 0x26f   : > { %v2158_v20 = vadd.f32 %v2126_v3, %v1690_v39 }
 0x271   : > { %v2174_v41 = vadd.f32 %v2158_v20, %v2142_v24 }
 0x273   : > { %2190 = vst.msk [vmem:[%s3614_s18 + $0x78] sm:$0xff] %vm395_vm15, %v2174_v41 }
 0x274 PF: > { %s15_s20 = sadd.s32 1, %s2728_s20   ;;  %s4345_s18 = smov %s2724_s19 }
 0x275   : > { %p12_p5 = scmp.ge.s32.totalorder %s15_s20, 4   ;;  %s4346_s19 = smov %s4348_s21 }
 0x277   :  { %14 = sbr.rel (!%p12_p5) target bundleno = 2 (0x2), region = 90 }

</bundles_post_ra>
